<compile_context>
chip_gen: v6e
topology: v6e:2x2x1
jax: 0.10.0
libtpu: 0.0.40
codegen_flags: <defaults>
</compile_context>

<pallas_src>
import functools
import math

import jax
import jax.numpy as jnp
from jax.experimental import pallas as pl
from jax.experimental.pallas import tpu as pltpu

LOG_2PI = math.log(2.0 * math.pi)
NEG_BIG = -1e30


def _round_up(v, m):
    return (v + m - 1) // m * m


def _icgmm_kernel(
    # inputs
    x_ref, mu_t_ref, const_ref, u_ref,
    # outputs
    pzu_ref, zu_ref, pf_ref, fz_ref,
    *, c_act, c_sample, n_real, tile_n,
):
    i = pl.program_id(0)
    cp = pzu_ref.shape[-1]                            # padded state count (128)

    x = x_ref[...]                                    # (TN, K) f32
    # Gaussian (unit-variance) emission log-likelihood via the expanded form
    #   f[n,c] = x.mu_c - 0.5||x||^2 - 0.5||mu_c||^2 - 0.5*K*log(2*pi)
    # (mild cancellation vs direct (x-mu)^2; fine at f32 for typical scales).
    g = jnp.dot(x, mu_t_ref[...], preferred_element_type=jnp.float32)   # MXU (TN, Cp)
    g = g - 0.5 * jnp.sum(x * x, axis=-1, keepdims=True)

    c_f = const_ref[0:1, :]          # -0.5||mu||^2 - 0.5*K*log(2*pi)          (1, Cp)
    c_u = const_ref[1:2, :]          # c_f + clamped log(alpha*beta + njk[0])  (1, Cp)
    f = g + c_f                      # f_X_theta_log
    unnorm = g + c_u                 # unnorm_log_p_zu

    lane = jax.lax.broadcasted_iota(jnp.int32, (x.shape[0], cp), 1)
    valid = lane < c_act

    # log-sum-exp over the Ccurr+1 live states -> posterior p_zu
    masked = jnp.where(valid, unnorm, NEG_BIG)
    m = jnp.max(masked, axis=-1, keepdims=True)
    e = jnp.where(valid, jnp.exp(masked - m), 0.0)
    log_zu = jnp.log(jnp.sum(e, axis=-1, keepdims=True)) + m
    p_zu = jnp.where(valid, jnp.exp(unnorm - log_zu), 0.0)

    # zu ~ Categorical(p_zu[:, :c_sample]) by inverse-CDF with one uniform per
    # node.  Lane prefix-sum through the MXU (upper-triangular ones matrix).
    ri = jax.lax.broadcasted_iota(jnp.int32, (cp, cp), 0)
    ci = jax.lax.broadcasted_iota(jnp.int32, (cp, cp), 1)
    tri = (ri <= ci).astype(jnp.float32)
    cum = jnp.dot(p_zu, tri, preferred_element_type=jnp.float32)        # (TN, Cp)

    u = u_ref[...]                                                      # (TN, 1) in [0,1)
    total = jnp.sum(jnp.where(lane < c_sample, p_zu, 0.0),
                    axis=-1, keepdims=True)
    thresh = u * total               # renormalizes over the c_sample sampled states
    zu = jnp.sum((cum <= thresh).astype(jnp.int32), axis=-1, keepdims=True)
    zu = jnp.minimum(zu, c_sample - 1)                                  # (TN, 1)

    # per-tile lane-wise partial sums for the two batch log-likelihoods; the
    # wrapper finishes the reduction (keeps the grid axis fully parallel).
    pf = p_zu * f
    fz = jnp.where(lane == zu, f, 0.0)
    if n_real % tile_n:              # static check: mask zero-padded rows
        row = jax.lax.broadcasted_iota(jnp.int32, (x.shape[0], 1), 0) + i * tile_n
        row_ok = row < n_real
        pf = jnp.where(row_ok, pf, 0.0)
        fz = jnp.where(row_ok, fz, 0.0)

    pzu_ref[...] = p_zu
    zu_ref[...] = zu
    pf_ref[...] = jnp.sum(pf, axis=0, keepdims=True).reshape(1, 1, cp)
    fz_ref[...] = jnp.sum(fz, axis=0, keepdims=True).reshape(1, 1, cp)


def icgmm_sampling_step(x, mu, alpha, beta, njk, j_batch, key, *, c_act, tile_n=512):
    """Eval-mode hot path of iCGMMBatch.sampling (first layer: j_batch == 0).

    Returns (p_zu, zu, complete_log_likelihood / N, complete_log_likelihood_2 / N).
    """
    n, k = x.shape
    max_c = njk.shape[1]
    c_pad = _round_up(max(c_act, 1), 128)
    # torch samples from p_zu[:, :-1] once the model is at capacity (Ccurr == max_C-1)
    c_sample = c_act - 1 if c_act == max_c else c_act

    tile_n = max(8, min(_round_up(tile_n, 8), _round_up(n, 8)))
    n_tiles = pl.cdiv(n, tile_n)
    n_pad = n_tiles * tile_n

    x_p = x.astype(jnp.float32)
    if n_pad != n:
        x_p = jnp.zeros((n_pad, k), jnp.float32).at[:n].set(x_p)

    mu_c = mu[:c_act].astype(jnp.float32)                                # (c_act, K)
    mu_t = jnp.zeros((k, c_pad), jnp.float32).at[:, :c_act].set(mu_c.T)  # (K, Cp)

    # Dirichlet-process prior folded into one resident row (first layer: j == 0).
    prior = alpha * beta[:c_act] + njk[0, :c_act]
    log_prior = jnp.clip(jnp.log(prior), -1e18, 1e18)    # torch's +-inf -> +-1e18 clamp
    c_f = -0.5 * jnp.sum(mu_c * mu_c, axis=1) - 0.5 * k * LOG_2PI
    consts = jnp.full((2, c_pad), NEG_BIG, jnp.float32)
    consts = consts.at[0, :c_act].set(c_f).at[1, :c_act].set(c_f + log_prior)

    # one uniform per node, generated host-side (tiling-independent stream)
    u = jax.random.uniform(key, (n_pad, 1), jnp.float32)

    kernel = functools.partial(
        _icgmm_kernel, c_act=c_act, c_sample=c_sample, n_real=n, tile_n=tile_n)

    p_zu, zu, pf_part, fz_part = pl.pallas_call(
        kernel,
        out_shape=(
            jax.ShapeDtypeStruct((n_pad, c_pad), jnp.float32),      # p_zu (lane padded)
            jax.ShapeDtypeStruct((n_pad, 1), jnp.int32),            # zu
            jax.ShapeDtypeStruct((n_tiles, 1, c_pad), jnp.float32),  # per-tile sum(p*f)
            jax.ShapeDtypeStruct((n_tiles, 1, c_pad), jnp.float32),  # per-tile sum(f@zu)
        ),
        grid=(n_tiles,),
        in_specs=[
            pl.BlockSpec((tile_n, k), lambda i: (i, 0)),       # x, un-padded feature dim
            pl.BlockSpec((k, c_pad), lambda i: (0, 0)),        # mu^T, resident
            pl.BlockSpec((2, c_pad), lambda i: (0, 0)),        # folded constants, resident
            pl.BlockSpec((tile_n, 1), lambda i: (i, 0)),       # uniforms
        ],
        out_specs=(
            pl.BlockSpec((tile_n, c_pad), lambda i: (i, 0)),
            pl.BlockSpec((tile_n, 1), lambda i: (i, 0)),
            pl.BlockSpec((1, 1, c_pad), lambda i: (i, 0, 0)),
            pl.BlockSpec((1, 1, c_pad), lambda i: (i, 0, 0)),
        ),
        compiler_params=pltpu.CompilerParams(dimension_semantics=("parallel",)),
    )(x_p, mu_t, consts, u)

    num_nodes = jnp.float32(n)
    cll1 = jnp.sum(pf_part) / num_nodes          # complete_log_likelihood / N
    cll2 = jnp.sum(fz_part) / num_nodes          # complete_log_likelihood_2 / N
    # module forward returns (None, embeddings=None, cll/N, cll2/N)
    return p_zu[:n, :c_act], zu[:n, 0], cll1, cll2


if __name__ == "__main__":
    key = jax.random.PRNGKey(0)

    # config (mirrors iCGMMBatch.__init__): depth=1 (first layer), alpha/gamma given
    N, K = 128, 8          # nodes, dim_node_features
    max_C, J = 16, 4
    Ccurr = 2              # Ccurr initialized to 2
    C_act = Ccurr + 1      # states evaluated in forward
    alpha = jnp.float32(1.5)
    gamma = jnp.float32(2.0)

    k_x, k_mu, k_b0, k_b1, k_u = jax.random.split(key, 5)

    # _init_beta(): stick-breaking with Beta(1, gamma) draws (deterministic PRNGKey)
    beta = jnp.zeros((max_C,), jnp.float32).at[0].set(1.0)
    for i, kb in enumerate([k_b0, k_b1]):
        b = jax.random.beta(kb, 1.0, gamma)
        tmp = beta[i]
        beta = beta.at[i].set(b * tmp).at[i + 1].set((1.0 - b) * tmp)

    # _init_theta(): one Gaussian emission (mean vector over K features) per state
    mu = jax.random.normal(k_mu, (C_act, K), jnp.float32)

    # init_permanent_accumulators(): njk starts at zero
    njk = jnp.zeros((J, max_C), jnp.float32)

    # first layer -> j_batch = zeros
    j_batch = jnp.zeros((N,), jnp.int32)

    x = jax.random.normal(k_x, (N, K), jnp.float32)

    out = icgmm_sampling_step(x, mu, alpha, beta, njk, j_batch, k_u, c_act=C_act)
    p_zu, zu, cll1, cll2 = jax.block_until_ready(out)

    # pure-JAX reference for the deterministic pieces
    d = x[:, None, :] - mu[None, :, :]
    f_ref = -0.5 * jnp.sum(d * d, axis=-1) - 0.5 * K * math.log(2.0 * math.pi)
    unnorm_ref = jnp.log(alpha * beta[:C_act] + njk[j_batch][:, :C_act]) + f_ref
    p_ref = jax.nn.softmax(unnorm_ref, axis=-1)

    assert p_zu.shape == (N, C_act) and zu.shape == (N,)
    assert jnp.allclose(p_zu, p_ref, rtol=1e-4, atol=1e-5)
    assert jnp.allclose(cll1, jnp.sum(p_ref * f_ref) / N, rtol=1e-4, atol=1e-3)
    assert jnp.allclose(cll2, jnp.sum(f_ref[jnp.arange(N), zu]) / N, rtol=1e-4, atol=1e-3)
    assert bool(jnp.all((zu >= 0) & (zu < C_act)))

    print("KERNEL_OK")
</pallas_src>

<mosaic_0001>
module attributes {stable_mosaic.version = 11 : i64} {
  func.func @_icgmm_kernel(%arg0: i32, %arg1: memref<128x8xf32, #tpu.memory_space<vmem>>, %arg2: memref<8x128xf32, #tpu.memory_space<vmem>>, %arg3: memref<2x128xf32, #tpu.memory_space<vmem>>, %arg4: memref<128x1xf32, #tpu.memory_space<vmem>>, %arg5: memref<128x128xf32, #tpu.memory_space<vmem>>, %arg6: memref<128x1xi32, #tpu.memory_space<vmem>>, %arg7: memref<1x1x128xf32, #tpu.memory_space<vmem>>, %arg8: memref<1x1x128xf32, #tpu.memory_space<vmem>>) attributes {dimension_semantics = [#tpu.dimension_semantics<parallel>], iteration_bounds = array<i64: 1>, scalar_prefetch = 0 : i64, scratch_operands = 0 : i64, tpu.core_type = #tpu.core_type<tc>, window_params = [{transform_indices = @transform_0, window_bounds = array<i64: 128, 8>}, {pipeline_mode = #tpu.pipeline_mode<synchronous>, transform_indices = @transform_1, window_bounds = array<i64: 8, 128>}, {pipeline_mode = #tpu.pipeline_mode<synchronous>, transform_indices = @transform_2, window_bounds = array<i64: 2, 128>}, {transform_indices = @transform_3, window_bounds = array<i64: 128, 1>}, {transform_indices = @transform_4, window_bounds = array<i64: 128, 128>}, {transform_indices = @transform_5, window_bounds = array<i64: 128, 1>}, {transform_indices = @transform_6, window_bounds = array<i64: 1, 1, 128>}, {transform_indices = @transform_7, window_bounds = array<i64: 1, 1, 128>}]} {
    %c0 = arith.constant 0 : index
    %c0_0 = arith.constant 0 : index
    %0 = vector.load %arg1[%c0, %c0_0] : memref<128x8xf32, #tpu.memory_space<vmem>>, vector<128x8xf32>
    %c0_1 = arith.constant 0 : index
    %c0_2 = arith.constant 0 : index
    %1 = vector.load %arg2[%c0_1, %c0_2] : memref<8x128xf32, #tpu.memory_space<vmem>>, vector<8x128xf32>
    %cst = arith.constant dense<0.000000e+00> : vector<128x128xf32>
    %2 = tpu.matmul %0, %1, %cst {dimension_numbers = #tpu.dot_dimension_numbers<[1], [0], [0], [1], [0, 0, 1, 1], [], []>} : vector<128x8xf32>, vector<8x128xf32>, vector<128x128xf32> -> vector<128x128xf32>
    %3 = arith.mulf %0, %0 : vector<128x8xf32>
    %cst_3 = arith.constant dense<0.000000e+00> : vector<128xf32>
    %4 = vector.multi_reduction <add>, %3, %cst_3 [1] : vector<128x8xf32> to vector<128xf32>
    %5 = vector.shape_cast %4 : vector<128xf32> to vector<128x1xf32>
    %cst_4 = arith.constant 5.000000e-01 : f32
    %6 = vector.broadcast %cst_4 : f32 to vector<128x1xf32>
    %7 = arith.mulf %6, %5 : vector<128x1xf32>
    %8 = vector.broadcast %7 : vector<128x1xf32> to vector<128x128xf32>
    %9 = arith.subf %2, %8 : vector<128x128xf32>
    %c0_5 = arith.constant 0 : index
    %c0_6 = arith.constant 0 : index
    %10 = vector.load %arg3[%c0_5, %c0_6] : memref<2x128xf32, #tpu.memory_space<vmem>>, vector<1x128xf32>
    %c1 = arith.constant 1 : index
    %c0_7 = arith.constant 0 : index
    %11 = vector.load %arg3[%c1, %c0_7] : memref<2x128xf32, #tpu.memory_space<vmem>>, vector<1x128xf32>
    %12 = vector.broadcast %10 : vector<1x128xf32> to vector<128x128xf32>
    %13 = arith.addf %9, %12 : vector<128x128xf32>
    %14 = vector.broadcast %11 : vector<1x128xf32> to vector<128x128xf32>
    %15 = arith.addf %9, %14 : vector<128x128xf32>
    %16 = tpu.iota {dimensions = array<i32: 1>} : vector<128x128xi32>
    %c3_i32 = arith.constant 3 : i32
    %17 = vector.broadcast %c3_i32 : i32 to vector<128x128xi32>
    %18 = arith.cmpi slt, %16, %17 : vector<128x128xi32>
    %cst_8 = arith.constant -1.000000e+30 : f32
    %19 = vector.broadcast %cst_8 : f32 to vector<128x128xf32>
    %20 = arith.select %18, %15, %19 : vector<128x128xi1>, vector<128x128xf32>
    %cst_9 = arith.constant dense<0xFF800000> : vector<128xf32>
    %21 = vector.multi_reduction <maximumf>, %20, %cst_9 [1] : vector<128x128xf32> to vector<128xf32>
    %22 = vector.shape_cast %21 : vector<128xf32> to vector<128x1xf32>
    %23 = vector.broadcast %22 : vector<128x1xf32> to vector<128x128xf32>
    %24 = arith.subf %20, %23 : vector<128x128xf32>
    %25 = math.exp %24 : vector<128x128xf32>
    %cst_10 = arith.constant 0.000000e+00 : f32
    %26 = vector.broadcast %cst_10 : f32 to vector<128x128xf32>
    %27 = arith.select %18, %25, %26 : vector<128x128xi1>, vector<128x128xf32>
    %cst_11 = arith.constant dense<0.000000e+00> : vector<128xf32>
    %28 = vector.multi_reduction <add>, %27, %cst_11 [1] : vector<128x128xf32> to vector<128xf32>
    %29 = vector.shape_cast %28 : vector<128xf32> to vector<128x1xf32>
    %30 = math.log %29 : vector<128x1xf32>
    %31 = arith.addf %30, %22 : vector<128x1xf32>
    %32 = vector.broadcast %31 : vector<128x1xf32> to vector<128x128xf32>
    %33 = arith.subf %15, %32 : vector<128x128xf32>
    %34 = math.exp %33 : vector<128x128xf32>
    %cst_12 = arith.constant 0.000000e+00 : f32
    %35 = vector.broadcast %cst_12 : f32 to vector<128x128xf32>
    %36 = arith.select %18, %34, %35 : vector<128x128xi1>, vector<128x128xf32>
    %37 = tpu.iota {dimensions = array<i32: 0>} : vector<128x128xi32>
    %38 = tpu.iota {dimensions = array<i32: 1>} : vector<128x128xi32>
    %39 = arith.cmpi sle, %37, %38 : vector<128x128xi32>
    %40 = arith.extui %39 : vector<128x128xi1> to vector<128x128xi32>
    %41 = arith.sitofp %40 : vector<128x128xi32> to vector<128x128xf32>
    %cst_13 = arith.constant dense<0.000000e+00> : vector<128x128xf32>
    %42 = tpu.matmul %36, %41, %cst_13 {dimension_numbers = #tpu.dot_dimension_numbers<[1], [0], [0], [1], [0, 0, 1, 1], [], []>} : vector<128x128xf32>, vector<128x128xf32>, vector<128x128xf32> -> vector<128x128xf32>
    %c0_14 = arith.constant 0 : index
    %c0_15 = arith.constant 0 : index
    %43 = vector.load %arg4[%c0_14, %c0_15] : memref<128x1xf32, #tpu.memory_space<vmem>>, vector<128x1xf32>
    %c3_i32_16 = arith.constant 3 : i32
    %44 = vector.broadcast %c3_i32_16 : i32 to vector<128x128xi32>
    %45 = arith.cmpi slt, %16, %44 : vector<128x128xi32>
    %cst_17 = arith.constant 0.000000e+00 : f32
    %46 = vector.broadcast %cst_17 : f32 to vector<128x128xf32>
    %47 = arith.select %45, %36, %46 : vector<128x128xi1>, vector<128x128xf32>
    %cst_18 = arith.constant dense<0.000000e+00> : vector<128xf32>
    %48 = vector.multi_reduction <add>, %47, %cst_18 [1] : vector<128x128xf32> to vector<128xf32>
    %49 = vector.shape_cast %48 : vector<128xf32> to vector<128x1xf32>
    %50 = arith.mulf %43, %49 : vector<128x1xf32>
    %51 = vector.broadcast %50 : vector<128x1xf32> to vector<128x128xf32>
    %52 = arith.cmpf ole, %42, %51 : vector<128x128xf32>
    %53 = arith.extui %52 : vector<128x128xi1> to vector<128x128xi32>
    %cst_19 = arith.constant dense<0> : vector<128xi32>
    %54 = vector.multi_reduction <add>, %53, %cst_19 [1] : vector<128x128xi32> to vector<128xi32>
    %55 = vector.shape_cast %54 : vector<128xi32> to vector<128x1xi32>
    %c2_i32 = arith.constant 2 : i32
    %56 = vector.broadcast %c2_i32 : i32 to vector<128x1xi32>
    %57 = arith.minsi %55, %56 : vector<128x1xi32>
    %58 = arith.mulf %36, %13 : vector<128x128xf32>
    %59 = vector.broadcast %57 : vector<128x1xi32> to vector<128x128xi32>
    %60 = arith.cmpi eq, %16, %59 : vector<128x128xi32>
    %cst_20 = arith.constant 0.000000e+00 : f32
    %61 = vector.broadcast %cst_20 : f32 to vector<128x128xf32>
    %62 = arith.select %60, %13, %61 : vector<128x128xi1>, vector<128x128xf32>
    %c0_21 = arith.constant 0 : index
    %c0_22 = arith.constant 0 : index
    %63 = vector.load %arg5[%c0_21, %c0_22] : memref<128x128xf32, #tpu.memory_space<vmem>>, vector<128x128xf32>
    tpu.vector_store %arg5[%c0_21, %c0_22], %36 {strides = array<i32>} : memref<128x128xf32, #tpu.memory_space<vmem>>, vector<128x128xf32>,
    %c0_23 = arith.constant 0 : index
    %c0_24 = arith.constant 0 : index
    %64 = vector.load %arg6[%c0_23, %c0_24] : memref<128x1xi32, #tpu.memory_space<vmem>>, vector<128x1xi32>
    tpu.vector_store %arg6[%c0_23, %c0_24], %57 {strides = array<i32>} : memref<128x1xi32, #tpu.memory_space<vmem>>, vector<128x1xi32>,
    %cst_25 = arith.constant dense<0.000000e+00> : vector<128xf32>
    %65 = vector.multi_reduction <add>, %58, %cst_25 [0] : vector<128x128xf32> to vector<128xf32>
    %66 = vector.shape_cast %65 : vector<128xf32> to vector<1x128xf32>
    %67 = vector.shape_cast %66 : vector<1x128xf32> to vector<1x1x128xf32>
    %c0_26 = arith.constant 0 : index
    %c0_27 = arith.constant 0 : index
    %c0_28 = arith.constant 0 : index
    %68 = vector.load %arg7[%c0_26, %c0_27, %c0_28] : memref<1x1x128xf32, #tpu.memory_space<vmem>>, vector<1x1x128xf32>
    tpu.vector_store %arg7[%c0_26, %c0_27, %c0_28], %67 {strides = array<i32>} : memref<1x1x128xf32, #tpu.memory_space<vmem>>, vector<1x1x128xf32>,
    %cst_29 = arith.constant dense<0.000000e+00> : vector<128xf32>
    %69 = vector.multi_reduction <add>, %62, %cst_29 [0] : vector<128x128xf32> to vector<128xf32>
    %70 = vector.shape_cast %69 : vector<128xf32> to vector<1x128xf32>
    %71 = vector.shape_cast %70 : vector<1x128xf32> to vector<1x1x128xf32>
    %c0_30 = arith.constant 0 : index
    %c0_31 = arith.constant 0 : index
    %c0_32 = arith.constant 0 : index
    %72 = vector.load %arg8[%c0_30, %c0_31, %c0_32] : memref<1x1x128xf32, #tpu.memory_space<vmem>>, vector<1x1x128xf32>
    tpu.vector_store %arg8[%c0_30, %c0_31, %c0_32], %71 {strides = array<i32>} : memref<1x1x128xf32, #tpu.memory_space<vmem>>, vector<1x1x128xf32>,
    return
  }
  func.func @transform_0(%arg0: i32) -> (i32, i32) {
    %c0_i32 = arith.constant 0 : i32
    %c0_i32_0 = arith.constant 0 : i32
    return %arg0, %c0_i32 : i32, i32
  }
  func.func @transform_1(%arg0: i32) -> (i32, i32) {
    %c0_i32 = arith.constant 0 : i32
    %c0_i32_0 = arith.constant 0 : i32
    %c0_i32_1 = arith.constant 0 : i32
    return %c0_i32, %c0_i32_0 : i32, i32
  }
  func.func @transform_2(%arg0: i32) -> (i32, i32) {
    %c0_i32 = arith.constant 0 : i32
    %c0_i32_0 = arith.constant 0 : i32
    %c0_i32_1 = arith.constant 0 : i32
    return %c0_i32, %c0_i32_0 : i32, i32
  }
  func.func @transform_3(%arg0: i32) -> (i32, i32) {
    %c0_i32 = arith.constant 0 : i32
    %c0_i32_0 = arith.constant 0 : i32
    return %arg0, %c0_i32 : i32, i32
  }
  func.func @transform_4(%arg0: i32) -> (i32, i32) {
    %c0_i32 = arith.constant 0 : i32
    %c0_i32_0 = arith.constant 0 : i32
    return %arg0, %c0_i32 : i32, i32
  }
  func.func @transform_5(%arg0: i32) -> (i32, i32) {
    %c0_i32 = arith.constant 0 : i32
    %c0_i32_0 = arith.constant 0 : i32
    return %arg0, %c0_i32 : i32, i32
  }
  func.func @transform_6(%arg0: i32) -> (i32, i32, i32) {
    %c0_i32 = arith.constant 0 : i32
    %c0_i32_0 = arith.constant 0 : i32
    %c0_i32_1 = arith.constant 0 : i32
    return %arg0, %c0_i32, %c0_i32_0 : i32, i32, i32
  }
  func.func @transform_7(%arg0: i32) -> (i32, i32, i32) {
    %c0_i32 = arith.constant 0 : i32
    %c0_i32_0 = arith.constant 0 : i32
    %c0_i32_1 = arith.constant 0 : i32
    return %arg0, %c0_i32, %c0_i32_0 : i32, i32, i32
  }
}

</mosaic_0001>

<bundles_post_ra>
// kernel: tpu_custom_call.1
= control target key start
LH: loop header
LB: loop body
LE: loop exit
PB: predicated region body
PF: predicated region fallthrough
CT: control target
= control target key end

     0   :  { %13 = vsyncpa [#allocation3], 0  ;;  %vm40_vm0 = vcmask 64512   ;;  %s2793_s0 = inlined_call_operand.vmem [shape: f32[128,8], index: 0, kind: input, shape index: {}]   ;;  %s2794_s1 = inlined_call_operand.vmem [shape: f32[8,128], index: 1, kind: input, shape index: {}]   ;;  %s2795_s2 = inlined_call_operand.vmem [shape: f32[2,128], index: 2, kind: input, shape index: {}]   ;;  %s2796_s3 = inlined_call_operand.vmem [shape: f32[128,1], index: 3, kind: input, shape index: {}]   ;;  %s2797_s4 = inlined_call_operand.hbm [shape: f32[128,128], index: 4, kind: output, shape index: {0}]   ;;  %s2798_s5 = inlined_call_operand.vmem [shape: s32[128,1], index: 5, kind: output, shape index: {1}]   ;;  %s2799_s6 = inlined_call_operand.hbm [shape: f32[1,1,128], index: 6, kind: output, shape index: {2}]   ;;  %s2800_s7 = inlined_call_operand.hbm [shape: f32[1,1,128], index: 7, kind: output, shape index: {3}]  }
   0x1   :  { %v39_v0 = vld [vmem:[%s2794_s1] sm:$0xff]  ;;  %v24_v2 = vld [vmem:[%s2793_s0 + $0x8] sm:$0xff]  ;;  %v25_v4 = vld [vmem:[%s2793_s0 + $0x10] sm:$0xff] }
   0x2   :  { %v23_v1 = vld [vmem:[%s2793_s0] sm:$0xff]  ;;  %1528 = vmatprep.subr.mxu0 %v39_v0  ;;  %v26_v5 = vld [vmem:[%s2793_s0 + $0x18] sm:$0xff]  ;;  %v235_v6 = vmul.f32 %v24_v2, %v24_v2  ;;  %v236_v7 = vmul.f32 %v25_v4, %v25_v4  ;;  %v28_v12 = vld [vmem:[%s2793_s0 + $0x28] sm:$0xff] }
   0x3   :  { %1530 = vmatprep.mubr.msk.f32.mxu0 %vm40_vm0, %v23_v1  ;;  %v234_v3 = vmul.f32 %v23_v1, %v23_v1  ;;  %1529 = vmatpush3.msra.mxu0 %v39_v0  ;;  %v237_v8 = vmul.f32 %v26_v5, %v26_v5  ;;  %v27_v10 = vld [vmem:[%s2793_s0 + $0x20] sm:$0xff] }
   0x4   :  { %1531 = vmatmul.mubr.msk.f32.vlgmr.msra.gmra.mxu0 %vm40_vm0, %v24_v2  ;;  %v256_v11 = vsel %vm40_vm0, %v236_v7, 0.0  ;;  %v253_v13 = vsel %vm40_vm0, %v235_v6, 0.0  ;;  %v238_v14 = vmul.f32 %v27_v10, %v27_v10 }
   0x5   :  { %v250_v9 = vsel %vm40_vm0, %v234_v3, 0.0  ;;  %1533 = vmatprep.mubr.msk.f32.mxu0 %vm40_vm0, %v25_v4  ;;  %257 = vadd.xlane.f32.xlu1 %v256_v11 }
   0x6   :  { %251 = vadd.xlane.f32.xlu0 %v250_v9 }
   0x7   :  { %14 = vsyncpa [#allocation5], 0  ;;  %v259_v15 = vsel %vm40_vm0, %v237_v8, 0.0  ;;  %v239_v16 = vmul.f32 %v28_v12, %v28_v12  ;;  %v29_v17 = vld [vmem:[%s2793_s0 + $0x30] sm:$0xff]  ;;  %v30_v18 = vld [vmem:[%s2793_s0 + $0x38] sm:$0xff]  ;;  %v262_v19 = vsel %vm40_vm0, %v238_v14, 0.0  ;;  %v372_v54 = vlaneseq }
   0x8   :  { %1534 = vmatmul.mubr.msk.f32.gmra.mxu0 %vm40_vm0, %v26_v5  ;;  %v240_v20 = vmul.f32 %v29_v17, %v29_v17  ;;  %v241_v22 = vmul.f32 %v30_v18, %v30_v18  ;;  %v31_v23 = vld [vmem:[%s2793_s0 + $0x40] sm:$0xff]  ;;  %v32_v24 = vld [vmem:[%s2793_s0 + $0x48] sm:$0xff]  ;;  %v33_v29 = vld [vmem:[%s2793_s0 + $0x50] sm:$0xff]  ;;  %s1814_s19 = smov [#allocation2]  }
   0x9   :  { %1536 = vmatprep.mubr.msk.f32.mxu0 %vm40_vm0, %v27_v10  ;;  %260 = vadd.xlane.f32.xlu1 %v259_v15  ;;  %v265_v21 = vsel %vm40_vm0, %v239_v16, 0.0  ;;  %v242_v26 = vmul.f32 %v31_v23, %v31_v23  ;;  %v243_v28 = vmul.f32 %v32_v24, %v32_v24  ;;  %v34_v30 = vld [vmem:[%s2793_s0 + $0x58] sm:$0xff]  ;;  %v244_v32 = vmul.f32 %v33_v29, %v33_v29  ;;  %v35_v35 = vld [vmem:[%s2793_s0 + $0x60] sm:$0xff]  ;;  %v36_v36 = vld [vmem:[%s2793_s0 + $0x68] sm:$0xff]  ;;  %s1371_s20 = sshll.u32 %s1814_s19, 4  ;;  %s1372_s20 = int_to_ptr.vmem [resolvable:$true] %s1371_s20 }
   0xa   :  { %254 = vadd.xlane.f32.xlu0 %v253_v13  ;;  %v268_v25 = vsel %vm40_vm0, %v240_v20, 0.0  ;;  %v271_v27 = vsel %vm40_vm0, %v241_v22, 0.0  ;;  %v245_v34 = vmul.f32 %v34_v30, %v34_v30  ;;  %v246_v38 = vmul.f32 %v35_v35, %v35_v35  ;;  %v37_v41 = vld [vmem:[%s2793_s0 + $0x70] sm:$0xff]  ;;  %v38_v42 = vld [vmem:[%s2793_s0 + $0x78] sm:$0xff]  ;;  %v1947_v60 = vld [vmem:[%s2795_s2 + $0x1] ss:$0 sm:$0xff] }
   0xb   :  { %v274_v31 = vsel %vm40_vm0, %v242_v26, 0.0  ;;  %v277_v33 = vsel %vm40_vm0, %v243_v28, 0.0  ;;  %v280_v37 = vsel %vm40_vm0, %v244_v32, 0.0  ;;  %v247_v40 = vmul.f32 %v36_v36, %v36_v36 }
   0xc   :  { %1537 = vmatmul.mubr.msk.f32.gmra.mxu0 %vm40_vm0, %v28_v12  ;;  %v283_v39 = vsel %vm40_vm0, %v245_v34, 0.0  ;;  %v286_v43 = vsel %vm40_vm0, %v246_v38, 0.0  ;;  %v248_v44 = vmul.f32 %v37_v41, %v37_v41  ;;  %v249_v46 = vmul.f32 %v38_v42, %v38_v42 }
   0xd   :  { %1539 = vmatprep.mubr.msk.f32.mxu0 %vm40_vm0, %v29_v17  ;;  %266 = vadd.xlane.f32.xlu1 %v265_v21  ;;  %v289_v45 = vsel %vm40_vm0, %v247_v40, 0.0  ;;  %v1942_v57 = vand.u32 127, %v372_v54 }
   0xe   :  { %263 = vadd.xlane.f32.xlu0 %v262_v19  ;;  %v292_v47 = vsel %vm40_vm0, %v248_v44, 0.0  ;;  %v295_v48 = vsel %vm40_vm0, %v249_v46, 0.0 }
   0xf   :  { %vm374_vm1 = vcmp.lt.s32.totalorder %v1942_v57, 3 }
  0x10   :  { %1540 = vmatmul.mubr.msk.f32.gmra.mxu0 %vm40_vm0, %v30_v18 }
  0x11   :  { %1542 = vmatprep.mubr.msk.f32.mxu0 %vm40_vm0, %v31_v23  ;;  %272 = vadd.xlane.f32.xlu1 %v271_v27 }
  0x12   :  { %269 = vadd.xlane.f32.xlu0 %v268_v25 }
  0x14   :  { %1543 = vmatmul.mubr.msk.f32.gmra.mxu0 %vm40_vm0, %v32_v24 }
  0x15   :  { %1545 = vmatprep.mubr.msk.f32.mxu0 %vm40_vm0, %v33_v29  ;;  %278 = vadd.xlane.f32.xlu1 %v277_v33 }
  0x16   :  { %275 = vadd.xlane.f32.xlu0 %v274_v31 }
  0x18   :  { %1546 = vmatmul.mubr.msk.f32.gmra.mxu0 %vm40_vm0, %v34_v30 }
  0x19   :  { %1548 = vmatprep.mubr.msk.f32.mxu0 %vm40_vm0, %v35_v35  ;;  %284 = vadd.xlane.f32.xlu1 %v283_v39 }
  0x1a   :  { %281 = vadd.xlane.f32.xlu0 %v280_v37 }
  0x1c   :  { %1549 = vmatmul.mubr.msk.f32.gmra.mxu0 %vm40_vm0, %v36_v36 }
  0x1d   :  { %1551 = vmatprep.mubr.msk.f32.mxu0 %vm40_vm0, %v37_v41  ;;  %290 = vadd.xlane.f32.xlu1 %v289_v45 }
  0x1e   :  { %287 = vadd.xlane.f32.xlu0 %v286_v43 }
  0x20   :  { %1552 = vmatmul.mubr.msk.f32.gmra.mxu0 %vm40_vm0, %v38_v42 }
  0x21   :  { %296 = vadd.xlane.f32.xlu1 %v295_v48 }
  0x22   :  { %293 = vadd.xlane.f32.xlu0 %v292_v47 }
  0x8e   :  { %v258_v49 = vpop.xlane.xlu1 %257 }
  0x8f   :  { %v252_v50 = vpop.xlane.xlu0 %251  ;;  %v300_v4 = vmul.f32 0.5, %v258_v49 }
  0x90   :  { %v298_v62 = vmul.f32 0.5, %v252_v50 }
  0x92   :  { %v261_v51 = vpop.xlane.xlu1 %260 }
  0x93   :  { %v255_v52 = vpop.xlane.xlu0 %254  ;;  %v301_v0 = vmul.f32 0.5, %v261_v51 }
  0x94   :  { %v299_v56 = vmul.f32 0.5, %v255_v52 }
  0x96   :  { %v267_v53 = vpop.xlane.xlu1 %266 }
  0x97   :  { %v264_v55 = vpop.xlane.xlu0 %263  ;;  %v303_v8 = vmul.f32 0.5, %v267_v53 }
  0x98   :  { %v302_v14 = vmul.f32 0.5, %v264_v55 }
  0x9a   :  { %v273_v58 = vpop.xlane.xlu1 %272 }
  0x9b   :  { %v270_v61 = vpop.xlane.xlu0 %269  ;;  %v305_v19 = vmul.f32 0.5, %v273_v58 }
  0x9c   :  { %v304_v25 = vmul.f32 0.5, %v270_v61 }
  0x9e   :  { %v279_v6 = vpop.xlane.xlu1 %278 }
  0x9f   :  { %v276_v12 = vpop.xlane.xlu0 %275  ;;  %v307_v31 = vmul.f32 0.5, %v279_v6 }
  0xa0   :  { %v306_v36 = vmul.f32 0.5, %v276_v12 }
  0xa2   :  { %v285_v23 = vpop.xlane.xlu1 %284 }
  0xa3   :  { %v282_v29 = vpop.xlane.xlu0 %281  ;;  %v309_v42 = vmul.f32 0.5, %v285_v23 }
  0xa4   :  { %v308_v48 = vmul.f32 0.5, %v282_v29 }
  0xa6   :  { %v291_v40 = vpop.xlane.xlu1 %290 }
  0xa7   :  { %v288_v46 = vpop.xlane.xlu0 %287  ;;  %v311_v53 = vmul.f32 0.5, %v291_v40 }
  0xc4   :  { %v1532_v59 = vpop.f32.mrf.mxu0 }
  0xc5   :  { %v1949_v63 = vsub.f32 %v1532_v59, %v299_v56  ;;  %v297_v59 = vpop.xlane.xlu1 %296 }
  0xc6   :  { %v155_v1 = vpop.f32.mrf.mxu0 }
  0xc7   :  { %v1952_v2 = vsub.f32 %v155_v1, %v298_v62  ;;  %v1956_v3 = vadd.f32 %v1947_v60, %v1949_v63  ;;  %v310_v62 = vmul.f32 0.5, %v288_v46 }
  0xc8   :  { %v1535_v5 = vpop.f32.mrf.mxu0 }
  0xc9   :  { %v1958_v7 = vsub.f32 %v1535_v5, %v301_v0  ;;  %v1963_v9 = vsel %vm374_vm1, %v1956_v3, -1e+30  ;;  %v1967_v10 = vadd.f32 %v1947_v60, %v1952_v2  ;;  %v294_v5 = vpop.xlane.xlu0 %293 }
  0xca   :  { %393 = vmax.xlane.f32.xlu1 %v1963_v9  ;;  %v165_v11 = vpop.f32.mrf.mxu0 }
  0xcb   :  { %v1970_v13 = vsub.f32 %v165_v11, %v300_v4  ;;  %v1975_v15 = vsel %vm374_vm1, %v1967_v10, -1e+30  ;;  %v1979_v16 = vadd.f32 %v1947_v60, %v1958_v7 }
  0xcc   :  { %391 = vmax.xlane.f32.xlu0 %v1975_v15  ;;  %v1538_v17 = vpop.f32.mrf.mxu0 }
  0xcd   :  { %v1982_v18 = vsub.f32 %v1538_v17, %v303_v8  ;;  %v1987_v20 = vsel %vm374_vm1, %v1979_v16, -1e+30  ;;  %v1991_v21 = vadd.f32 %v1947_v60, %v1970_v13  ;;  %v313_v8 = vmul.f32 0.5, %v297_v59 }
  0xce   :  { %397 = vmax.xlane.f32.xlu1 %v1987_v20  ;;  %v175_v22 = vpop.f32.mrf.mxu0 }
  0xcf   :  { %v1994_v24 = vsub.f32 %v175_v22, %v302_v14  ;;  %v1999_v26 = vsel %vm374_vm1, %v1991_v21, -1e+30  ;;  %v2003_v27 = vadd.f32 %v1947_v60, %v1982_v18 }
  0xd0   :  { %395 = vmax.xlane.f32.xlu0 %v1999_v26  ;;  %v1541_v28 = vpop.f32.mrf.mxu0 }
  0xd1   :  { %v2006_v30 = vsub.f32 %v1541_v28, %v305_v19  ;;  %v2011_v32 = vsel %vm374_vm1, %v2003_v27, -1e+30  ;;  %v2015_v33 = vadd.f32 %v1947_v60, %v1994_v24  ;;  %v312_v19 = vmul.f32 0.5, %v294_v5 }
  0xd2   :  { %401 = vmax.xlane.f32.xlu1 %v2011_v32  ;;  %v185_v34 = vpop.f32.mrf.mxu0 }
  0xd3   :  { %v2018_v35 = vsub.f32 %v185_v34, %v304_v25  ;;  %v2023_v37 = vsel %vm374_vm1, %v2015_v33, -1e+30  ;;  %v2027_v38 = vadd.f32 %v1947_v60, %v2006_v30 }
  0xd4   :  { %399 = vmax.xlane.f32.xlu0 %v2023_v37  ;;  %v1544_v39 = vpop.f32.mrf.mxu0 }
  0xd5   :  { %v2030_v41 = vsub.f32 %v1544_v39, %v307_v31  ;;  %v2035_v43 = vsel %vm374_vm1, %v2027_v38, -1e+30  ;;  %v2039_v44 = vadd.f32 %v1947_v60, %v2018_v35 }
  0xd6   :  { %405 = vmax.xlane.f32.xlu1 %v2035_v43  ;;  %v195_v45 = vpop.f32.mrf.mxu0 }
  0xd7   :  { %v2042_v47 = vsub.f32 %v195_v45, %v306_v36  ;;  %v2047_v49 = vsel %vm374_vm1, %v2039_v44, -1e+30  ;;  %v2051_v50 = vadd.f32 %v1947_v60, %v2030_v41 }
  0xd8   :  { %403 = vmax.xlane.f32.xlu0 %v2047_v49  ;;  %v1547_v51 = vpop.f32.mrf.mxu0 }
  0xd9   :  { %v2054_v52 = vsub.f32 %v1547_v51, %v309_v42  ;;  %v2059_v55 = vsel %vm374_vm1, %v2051_v50, -1e+30  ;;  %v2063_v56 = vadd.f32 %v1947_v60, %v2042_v47 }
  0xda   :  { %409 = vmax.xlane.f32.xlu1 %v2059_v55  ;;  %v205_v58 = vpop.f32.mrf.mxu0 }
  0xdb   :  { %v2066_v61 = vsub.f32 %v205_v58, %v308_v48  ;;  %v2071_v0 = vsel %vm374_vm1, %v2063_v56, -1e+30  ;;  %v2075_v1 = vadd.f32 %v1947_v60, %v2054_v52 }
  0xdc   :  { %407 = vmax.xlane.f32.xlu0 %v2071_v0  ;;  %v1550_v4 = vpop.f32.mrf.mxu0 }
  0xdd   :  { %v2078_v6 = vsub.f32 %v1550_v4, %v311_v53  ;;  %v2083_v11 = vsel %vm374_vm1, %v2075_v1, -1e+30  ;;  %v2087_v12 = vadd.f32 %v1947_v60, %v2066_v61 }
  0xde   :  { %413 = vmax.xlane.f32.xlu1 %v2083_v11  ;;  %v215_v14 = vpop.f32.mrf.mxu0 }
  0xdf   :  { %v2090_v17 = vsub.f32 %v215_v14, %v310_v62  ;;  %v2095_v22 = vsel %vm374_vm1, %v2087_v12, -1e+30  ;;  %v2099_v23 = vadd.f32 %v1947_v60, %v2078_v6 }
  0xe0   :  { %411 = vmax.xlane.f32.xlu0 %v2095_v22  ;;  %v1553_v25 = vpop.f32.mrf.mxu0 }
  0xe1   :  { %v2102_v28 = vsub.f32 %v1553_v25, %v313_v8  ;;  %v2107_v29 = vsel %vm374_vm1, %v2099_v23, -1e+30  ;;  %v2111_v31 = vadd.f32 %v1947_v60, %v2090_v17 }
  0xe2   :  { %417 = vmax.xlane.f32.xlu1 %v2107_v29  ;;  %v225_v34 = vpop.f32.mrf.mxu0 }
  0xe3   :  { %2803 = vst [vmem:[#allocation9_spill] sm:$0xff] %v2102_v28  ;;  %v2114_v36 = vsub.f32 %v225_v34, %v312_v19  ;;  %v2119_v39 = vsel %vm374_vm1, %v2111_v31, -1e+30  ;;  %v2123_v40 = vadd.f32 %v1947_v60, %v2102_v28 }
  0xe4   :  { %415 = vmax.xlane.f32.xlu0 %v2119_v39 }
  0xe5   :  { %2804 = vst [vmem:[#allocation10_spill] sm:$0xff] %v2114_v36  ;;  %v2129_v42 = vsel %vm374_vm1, %v2123_v40, -1e+30  ;;  %v2133_v45 = vadd.f32 %v1947_v60, %v2114_v36 }
  0xe6   :  { %421 = vmax.xlane.f32.xlu1 %v2129_v42 }
  0xe7   :  { %v2139_v46 = vsel %vm374_vm1, %v2133_v45, -1e+30 }
  0xe8   :  { %419 = vmax.xlane.f32.xlu0 %v2139_v46 }
 0x153   :  { %v2142_v48 = vpop.xlane.xlu1 %393 }
 0x154   :  { %v424_v51 = vsub.f32 %v1963_v9, %v2142_v48 }
 0x155   :  { %v2146_v53 = vpop.xlane.xlu0 %391 }
 0x156   :  { %v441_v58 = vmul.f32 1.442695, %v424_v51  ;;  %v423_v60 = vsub.f32 %v1975_v15, %v2146_v53 }
 0x157   :  { %v2150_v59 = vpop.xlane.xlu1 %397 }
 0x158   :  { %1651 = vpow2.f32 %v441_v58  ;;  %v439_v62 = vmul.f32 1.442695, %v423_v60  ;;  %v426_v4 = vsub.f32 %v1987_v20, %v2150_v59 }
 0x159   :  { %v2154_v5 = vpop.xlane.xlu0 %395 }
 0x15a   :  { %1653 = vpow2.f32 %v439_v62  ;;  %v445_v8 = vmul.f32 1.442695, %v426_v4  ;;  %v425_v9 = vsub.f32 %v1999_v26, %v2154_v5 }
 0x15b   :  { %v2158_v14 = vpop.xlane.xlu1 %401 }
 0x15c   :  { %1655 = vpow2.f32 %v445_v8  ;;  %v443_v19 = vmul.f32 1.442695, %v425_v9  ;;  %v428_v15 = vsub.f32 %v2011_v32, %v2158_v14 }
 0x15d   :  { %v2162_v25 = vpop.xlane.xlu0 %399 }
 0x15e   :  { %1657 = vpow2.f32 %v443_v19  ;;  %v449_v34 = vmul.f32 1.442695, %v428_v15  ;;  %v427_v20 = vsub.f32 %v2023_v37, %v2162_v25 }
 0x15f   :  { %v2166_v51 = vpop.xlane.xlu1 %405 }
 0x160   :  { %1659 = vpow2.f32 %v449_v34  ;;  %v447_v58 = vmul.f32 1.442695, %v427_v20  ;;  %v430_v26 = vsub.f32 %v2035_v43, %v2166_v51 }
 0x161   :  { %v2170_v60 = vpop.xlane.xlu0 %403 }
 0x162   :  { %1661 = vpow2.f32 %v447_v58  ;;  %v453_v62 = vmul.f32 1.442695, %v430_v26  ;;  %v429_v32 = vsub.f32 %v2047_v49, %v2170_v60 }
 0x163   :  { %v2174_v4 = vpop.xlane.xlu1 %409 }
 0x164   :  { %1663 = vpow2.f32 %v453_v62  ;;  %v451_v8 = vmul.f32 1.442695, %v429_v32  ;;  %v432_v37 = vsub.f32 %v2059_v55, %v2174_v4 }
 0x165   :  { %v1652_v9 = vpop.eup %1651  ;;  %v2178_v19 = vpop.xlane.xlu0 %407 }
 0x166   :  { %1665 = vpow2.f32 %v451_v8  ;;  %v457_v15 = vmul.f32 1.442695, %v432_v37  ;;  %v431_v43 = vsub.f32 %v2071_v0, %v2178_v19  ;;  %v472_v34 = vsel %vm374_vm1, %v1652_v9, 0.0 }
 0x167   :  { %v1654_v20 = vpop.eup %1653  ;;  %v2184_v49 = vpop.xlane.xlu1 %413  ;;  %489 = vadd.xlane.f32.xlu1 %v472_v34 }
 0x168   :  { %1667 = vpow2.f32 %v457_v15  ;;  %v455_v58 = vmul.f32 1.442695, %v431_v43  ;;  %v434_v55 = vsub.f32 %v2083_v11, %v2184_v49  ;;  %v471_v26 = vsel %vm374_vm1, %v1654_v20, 0.0 }
 0x169   :  { %v1656_v62 = vpop.eup %1655  ;;  %v2190_v32 = vpop.xlane.xlu0 %411  ;;  %487 = vadd.xlane.f32.xlu0 %v471_v26 }
 0x16a   :  { %1669 = vpow2.f32 %v455_v58  ;;  %v461_v0 = vmul.f32 1.442695, %v434_v55  ;;  %v433_v8 = vsub.f32 %v2095_v22, %v2190_v32  ;;  %v474_v37 = vsel %vm374_vm1, %v1656_v62, 0.0 }
 0x16b   :  { %v1658_v9 = vpop.eup %1657  ;;  %v2196_v15 = vpop.xlane.xlu1 %417  ;;  %493 = vadd.xlane.f32.xlu1 %v474_v37 }
 0x16c   :  { %1671 = vpow2.f32 %v461_v0  ;;  %v459_v11 = vmul.f32 1.442695, %v433_v8  ;;  %v436_v43 = vsub.f32 %v2107_v29, %v2196_v15  ;;  %v473_v34 = vsel %vm374_vm1, %v1658_v9, 0.0 }
 0x16d   :  { %v1660_v20 = vpop.eup %1659  ;;  %v2202_v58 = vpop.xlane.xlu0 %415  ;;  %491 = vadd.xlane.f32.xlu0 %v473_v34 }
 0x16e   :  { %1673 = vpow2.f32 %v459_v11  ;;  %v465_v22 = vmul.f32 1.442695, %v436_v43  ;;  %v435_v55 = vsub.f32 %v2119_v39, %v2202_v58  ;;  %v476_v26 = vsel %vm374_vm1, %v1660_v20, 0.0 }
 0x16f   :  { %v1662_v62 = vpop.eup %1661  ;;  %497 = vadd.xlane.f32.xlu1 %v476_v26  ;;  %v2208_v0 = vpop.xlane.xlu1 %421 }
 0x170   :  { %1675 = vpow2.f32 %v465_v22  ;;  %v463_v29 = vmul.f32 1.442695, %v435_v55  ;;  %v438_v8 = vsub.f32 %v2129_v42, %v2208_v0  ;;  %v475_v37 = vsel %vm374_vm1, %v1662_v62, 0.0 }
 0x171   :  { %v1664_v9 = vpop.eup %1663  ;;  %495 = vadd.xlane.f32.xlu0 %v475_v37  ;;  %v2214_v11 = vpop.xlane.xlu0 %419  ;;  %v2221_v22 = vshrl.u32 %v372_v54, 7 }
 0x172   :  { %1677 = vpow2.f32 %v463_v29  ;;  %v469_v39 = vmul.f32 1.442695, %v438_v8  ;;  %v437_v43 = vsub.f32 %v2139_v46, %v2214_v11  ;;  %v478_v34 = vsel %vm374_vm1, %v1664_v9, 0.0 }
 0x173   :  { %v1666_v20 = vpop.eup %1665  ;;  %501 = vadd.xlane.f32.xlu1 %v478_v34  ;;  %v647_v62 = vadd.s32 120, %v2221_v22  ;;  %v1811_v8 = vmov 1.0   ;;  %v646_v37 = vadd.s32 112, %v2221_v22 }
 0x174   :  { %1679 = vpow2.f32 %v469_v39  ;;  %v467_v42 = vmul.f32 1.442695, %v437_v43  ;;  %v477_v55 = vsel %vm374_vm1, %v1666_v20, 0.0  ;;  %v645_v43 = vadd.s32 104, %v2221_v22 }
 0x175   :  { %v1668_v26 = vpop.eup %1667  ;;  %499 = vadd.xlane.f32.xlu0 %v477_v55  ;;  %vm663_vm2 = vcmp.le.s32.totalorder %v647_v62, %v1942_v57  ;;  %vm662_vm3 = vcmp.le.s32.totalorder %v646_v37, %v1942_v57  ;;  %v643_v62 = vadd.s32 88, %v2221_v22 }
 0x176   :  { %1681 = vpow2.f32 %v467_v42  ;;  %v480_v46 = vsel %vm374_vm1, %v1668_v26, 0.0  ;;  %1554 = vmatprep.subr.msk.mxu0 %vm663_vm2, %v1811_v8  ;;  %1610 = vmatprep.subr.msk.mxu1 %vm663_vm2, %v1811_v8  ;;  %vm661_vm4 = vcmp.le.s32.totalorder %v645_v43, %v1942_v57  ;;  %v644_v42 = vadd.s32 96, %v2221_v22 }
 0x177   :  { %v1670_v29 = vpop.eup %1669  ;;  %505 = vadd.xlane.f32.xlu1 %v480_v46  ;;  %1555 = vmatpush3.msk.msra.mxu0 %vm663_vm2, %v1811_v8  ;;  %vm659_vm6 = vcmp.le.s32.totalorder %v643_v62, %v1942_v57  ;;  %v639_v43 = vadd.s32 56, %v2221_v22  ;;  %v636_v62 = vadd.s32 32, %v2221_v22 }
 0x178   :  { %v479_v54 = vsel %vm374_vm1, %v1670_v29, 0.0  ;;  %1626 = vmatpush3.msk.msra.mxu1 %vm663_vm2, %v1811_v8  ;;  %1556 = vmatprep.subr.msk.mxu0 %vm662_vm3, %v1811_v8  ;;  %vm660_vm5 = vcmp.le.s32.totalorder %v644_v42, %v1942_v57  ;;  %v637_v42 = vadd.s32 40, %v2221_v22  ;;  %vm648_vm2 = vcmp.le.s32.totalorder %v2221_v22, %v1942_v57 }
 0x179   :  { %v1672_v9 = vpop.eup %1671  ;;  %503 = vadd.xlane.f32.xlu0 %v479_v54  ;;  %1557 = vmatpush3.msk.msra.mxu0 %vm662_vm3, %v1811_v8  ;;  %v642_v54 = vadd.s32 80, %v2221_v22  ;;  %vm655_vm10 = vcmp.le.s32.totalorder %v639_v43, %v1942_v57  ;;  %vm652_vm13 = vcmp.le.s32.totalorder %v636_v62, %v1942_v57 }
 0x17a   :  { %v482_v39 = vsel %vm374_vm1, %v1672_v9, 0.0  ;;  %1611 = vmatprep.subr.msk.mxu1 %vm662_vm3, %v1811_v8  ;;  %1558 = vmatprep.subr.msk.mxu0 %vm661_vm4, %v1811_v8  ;;  %vm653_vm12 = vcmp.le.s32.totalorder %v637_v42, %v1942_v57 }
 0x17b   :  { %v1674_v34 = vpop.eup %1673  ;;  %509 = vadd.xlane.f32.xlu1 %v482_v39  ;;  %1559 = vmatpush3.msk.msra.mxu0 %vm661_vm4, %v1811_v8  ;;  %vm658_vm7 = vcmp.le.s32.totalorder %v642_v54, %v1942_v57  ;;  %v641_v39 = vadd.s32 72, %v2221_v22  ;;  %v633_v54 = vadd.s32 8, %v2221_v22 }
 0x17c   :  { %v481_v20 = vsel %vm374_vm1, %v1674_v34, 0.0  ;;  %1627 = vmatpush3.msk.msra.mxu1 %vm662_vm3, %v1811_v8  ;;  %1560 = vmatprep.subr.msk.mxu0 %vm660_vm5, %v1811_v8 }
 0x17d   :  { %v1676_v55 = vpop.eup %1675  ;;  %507 = vadd.xlane.f32.xlu0 %v481_v20  ;;  %1561 = vmatpush3.msk.msra.mxu0 %vm660_vm5, %v1811_v8  ;;  %vm657_vm8 = vcmp.le.s32.totalorder %v641_v39, %v1942_v57  ;;  %vm649_vm0 = vcmp.le.s32.totalorder %v633_v54, %v1942_v57 }
 0x17e   :  { %v484_v26 = vsel %vm374_vm1, %v1676_v55, 0.0  ;;  %1612 = vmatprep.subr.msk.mxu1 %vm661_vm4, %v1811_v8  ;;  %1562 = vmatprep.subr.msk.mxu0 %vm659_vm6, %v1811_v8  ;;  %v640_v55 = vadd.s32 64, %v2221_v22 }
 0x17f   :  { %v1678_v46 = vpop.eup %1677  ;;  %513 = vadd.xlane.f32.xlu1 %v484_v26  ;;  %1563 = vmatpush3.msk.msra.mxu0 %vm659_vm6, %v1811_v8  ;;  %v638_v26 = vadd.s32 48, %v2221_v22 }
 0x180   :  { %v483_v29 = vsel %vm374_vm1, %v1678_v46, 0.0  ;;  %1628 = vmatpush3.msk.msra.mxu1 %vm661_vm4, %v1811_v8  ;;  %1564 = vmatprep.subr.msk.mxu0 %vm658_vm7, %v1811_v8  ;;  %vm656_vm9 = vcmp.le.s32.totalorder %v640_v55, %v1942_v57  ;;  %v635_v46 = vadd.s32 24, %v2221_v22 }
 0x181   :  { %v1680_v37 = vpop.eup %1679  ;;  %511 = vadd.xlane.f32.xlu0 %v483_v29  ;;  %1565 = vmatpush3.msk.msra.mxu0 %vm658_vm7, %v1811_v8  ;;  %vm654_vm11 = vcmp.le.s32.totalorder %v638_v26, %v1942_v57  ;;  %v634_v29 = vadd.s32 16, %v2221_v22 }
 0x182   :  { %v486_v9 = vsel %vm374_vm1, %v1680_v37, 0.0  ;;  %1613 = vmatprep.subr.msk.mxu1 %vm660_vm5, %v1811_v8  ;;  %1566 = vmatprep.subr.msk.mxu0 %vm657_vm8, %v1811_v8  ;;  %vm651_vm14 = vcmp.le.s32.totalorder %v635_v46, %v1942_v57 }
 0x183   :  { %v1682_v34 = vpop.eup %1681  ;;  %517 = vadd.xlane.f32.xlu1 %v486_v9  ;;  %1567 = vmatpush3.msk.msra.mxu0 %vm657_vm8, %v1811_v8  ;;  %vm650_vm15 = vcmp.le.s32.totalorder %v634_v29, %v1942_v57 }
 0x184   :  { %v485_v20 = vsel %vm374_vm1, %v1682_v34, 0.0  ;;  %1629 = vmatpush3.msk.msra.mxu1 %vm660_vm5, %v1811_v8  ;;  %1568 = vmatprep.subr.msk.mxu0 %vm656_vm9, %v1811_v8 }
 0x185   :  { %515 = vadd.xlane.f32.xlu0 %v485_v20  ;;  %1614 = vmatprep.subr.msk.mxu1 %vm659_vm6, %v1811_v8 }
 0x186   :  { %1569 = vmatpush3.msk.msra.mxu0 %vm656_vm9, %v1811_v8  ;;  %1630 = vmatpush3.msk.msra.mxu1 %vm659_vm6, %v1811_v8 }
 0x187   :  { %1570 = vmatprep.subr.msk.mxu0 %vm655_vm10, %v1811_v8  ;;  %1615 = vmatprep.subr.msk.mxu1 %vm658_vm7, %v1811_v8 }
 0x188   :  { %1571 = vmatpush3.msk.msra.mxu0 %vm655_vm10, %v1811_v8  ;;  %1631 = vmatpush3.msk.msra.mxu1 %vm658_vm7, %v1811_v8 }
 0x189   :  { %1572 = vmatprep.subr.msk.mxu0 %vm654_vm11, %v1811_v8  ;;  %1616 = vmatprep.subr.msk.mxu1 %vm657_vm8, %v1811_v8 }
 0x18a   :  { %1573 = vmatpush3.msk.msra.mxu0 %vm654_vm11, %v1811_v8  ;;  %1632 = vmatpush3.msk.msra.mxu1 %vm657_vm8, %v1811_v8 }
 0x18b   :  { %1617 = vmatprep.subr.msk.mxu1 %vm656_vm9, %v1811_v8  ;;  %1574 = vmatprep.subr.msk.mxu0 %vm653_vm12, %v1811_v8 }
 0x18c   :  { %1633 = vmatpush3.msk.msra.mxu1 %vm656_vm9, %v1811_v8  ;;  %1575 = vmatpush3.msk.msra.mxu0 %vm653_vm12, %v1811_v8 }
 0x18d   :  { %1618 = vmatprep.subr.msk.mxu1 %vm655_vm10, %v1811_v8  ;;  %1576 = vmatprep.subr.msk.mxu0 %vm652_vm13, %v1811_v8 }
 0x18e   :  { %1634 = vmatpush3.msk.msra.mxu1 %vm655_vm10, %v1811_v8  ;;  %1577 = vmatpush3.msk.msra.mxu0 %vm652_vm13, %v1811_v8 }
 0x18f   :  { %1619 = vmatprep.subr.msk.mxu1 %vm654_vm11, %v1811_v8  ;;  %1578 = vmatprep.subr.msk.mxu0 %vm651_vm14, %v1811_v8 }
 0x190   :  { %1635 = vmatpush3.msk.msra.mxu1 %vm654_vm11, %v1811_v8  ;;  %1579 = vmatpush3.msk.msra.mxu0 %vm651_vm14, %v1811_v8 }
 0x191   :  { %1620 = vmatprep.subr.msk.mxu1 %vm653_vm12, %v1811_v8  ;;  %1580 = vmatprep.subr.msk.mxu0 %vm650_vm15, %v1811_v8 }
 0x192   :  { %1636 = vmatpush3.msk.msra.mxu1 %vm653_vm12, %v1811_v8  ;;  %1581 = vmatpush3.msk.msra.mxu0 %vm650_vm15, %v1811_v8 }
 0x193   :  { %1621 = vmatprep.subr.msk.mxu1 %vm652_vm13, %v1811_v8  ;;  %1582 = vmatprep.subr.msk.mxu0 %vm649_vm0, %v1811_v8 }
 0x194   :  { %1637 = vmatpush3.msk.msra.mxu1 %vm652_vm13, %v1811_v8  ;;  %1583 = vmatpush3.msk.msra.mxu0 %vm649_vm0, %v1811_v8 }
 0x195   :  { %1622 = vmatprep.subr.msk.mxu1 %vm651_vm14, %v1811_v8  ;;  %1584 = vmatprep.subr.msk.mxu0 %vm648_vm2, %v1811_v8 }
 0x196   :  { %1638 = vmatpush3.msk.msra.mxu1 %vm651_vm14, %v1811_v8  ;;  %1585 = vmatpush3.msk.msra.mxu0 %vm648_vm2, %v1811_v8 }
 0x197   :  { %1623 = vmatprep.subr.msk.mxu1 %vm650_vm15, %v1811_v8 }
 0x198   :  { %1639 = vmatpush3.msk.msra.mxu1 %vm650_vm15, %v1811_v8 }
 0x199   :  { %1624 = vmatprep.subr.msk.mxu1 %vm649_vm0, %v1811_v8 }
 0x19a   :  { %1640 = vmatpush3.msk.msra.mxu1 %vm649_vm0, %v1811_v8 }
 0x19b   :  { %1625 = vmatprep.subr.msk.mxu1 %vm648_vm2, %v1811_v8 }
 0x19c   :  { %1641 = vmatpush3.msk.msra.mxu1 %vm648_vm2, %v1811_v8 }
 0x1f0   :  { %v490_v22 = vpop.xlane.xlu1 %489 }
 0x1f1   :  { %1683 = vlog2.f32 %v490_v22 }
 0x1f2   :  { %v488_v37 = vpop.xlane.xlu0 %487 }
 0x1f3   :  { %1685 = vlog2.f32 %v488_v37 }
 0x1f4   :  { %v494_v9 = vpop.xlane.xlu1 %493 }
 0x1f5   :  { %1687 = vlog2.f32 %v494_v9 }
 0x1f6   :  { %v492_v39 = vpop.xlane.xlu0 %491 }
 0x1f7   :  { %1689 = vlog2.f32 %v492_v39 }
 0x1f8   :  { %v498_v34 = vpop.xlane.xlu1 %497 }
 0x1f9   :  { %1691 = vlog2.f32 %v498_v34 }
 0x1fa   :  { %v496_v20 = vpop.xlane.xlu0 %495 }
 0x1fb   :  { %1693 = vlog2.f32 %v496_v20 }
 0x1fc   :  { %v502_v55 = vpop.xlane.xlu1 %501 }
 0x1fd   :  { %1695 = vlog2.f32 %v502_v55 }
 0x1fe   :  { %v1684_v43 = vpop.eup %1683  ;;  %v500_v26 = vpop.xlane.xlu0 %499 }
 0x1ff   :  { %v522_v42 = vmul.f32 0.6931472, %v1684_v43  ;;  %1697 = vlog2.f32 %v500_v26 }
 0x200   :  { %v1686_v62 = vpop.eup %1685  ;;  %v506_v8 = vpop.xlane.xlu1 %505 }
 0x201   :  { %v552_v46 = vadd.f32 %v522_v42, %v2142_v48  ;;  %v520_v29 = vmul.f32 0.6931472, %v1686_v62  ;;  %1699 = vlog2.f32 %v506_v8 }
 0x202   :  { %v1688_v54 = vpop.eup %1687  ;;  %v504_v22 = vpop.xlane.xlu0 %503 }
 0x203   :  { %v568_v37 = vsub.f32 %v1956_v3, %v552_v46  ;;  %v551_v9 = vadd.f32 %v520_v29, %v2146_v53  ;;  %v526_v39 = vmul.f32 0.6931472, %v1688_v54  ;;  %1701 = vlog2.f32 %v504_v22 }
 0x204   :  { %v1690_v34 = vpop.eup %1689  ;;  %v510_v20 = vpop.xlane.xlu1 %509 }
 0x205   :  { %v585_v55 = vmul.f32 1.442695, %v568_v37  ;;  %v567_v43 = vsub.f32 %v1967_v10, %v551_v9  ;;  %v554_v26 = vadd.f32 %v526_v39, %v2150_v59  ;;  %v524_v28 = vmul.f32 0.6931472, %v1690_v34 }
 0x206   :  { %v1692_v36 = vpop.eup %1691  ;;  %1703 = vlog2.f32 %v510_v20  ;;  %v508_v48 = vpop.xlane.xlu0 %507 }
 0x207   :  { %1705 = vpow2.f32 %v585_v55  ;;  %v583_v42 = vmul.f32 1.442695, %v567_v43  ;;  %v570_v62 = vsub.f32 %v1979_v16, %v554_v26  ;;  %v553_v3 = vadd.f32 %v524_v28, %v2154_v5 }
 0x208   :  { %v1694_v53 = vpop.eup %1693  ;;  %v530_v8 = vmul.f32 0.6931472, %v1692_v36  ;;  %1707 = vlog2.f32 %v508_v48  ;;  %v514_v46 = vpop.xlane.xlu1 %513 }
 0x209   :  { %1709 = vpow2.f32 %v583_v42  ;;  %v589_v29 = vmul.f32 1.442695, %v570_v62  ;;  %v569_v10 = vsub.f32 %v1991_v21, %v553_v3  ;;  %v528_v54 = vmul.f32 0.6931472, %v1694_v53 }
 0x20a   :  { %v1696_v59 = vpop.eup %1695  ;;  %v556_v22 = vadd.f32 %v530_v8, %v2158_v14  ;;  %1711 = vlog2.f32 %v514_v46  ;;  %v512_v37 = vpop.xlane.xlu0 %511 }
 0x20b   :  { %1713 = vpow2.f32 %v589_v29  ;;  %v587_v9 = vmul.f32 1.442695, %v569_v10  ;;  %v555_v16 = vadd.f32 %v528_v54, %v2162_v25  ;;  %v534_v39 = vmul.f32 0.6931472, %v1696_v59 }
 0x20c   :  { %v1698_v28 = vpop.eup %1697  ;;  %v572_v36 = vsub.f32 %v2003_v27, %v556_v22  ;;  %1715 = vlog2.f32 %v512_v37  ;;  %v518_v5 = vpop.xlane.xlu1 %517 }
 0x20d   :  { %1717 = vpow2.f32 %v587_v9  ;;  %v571_v34 = vsub.f32 %v2015_v33, %v555_v16  ;;  %v558_v21 = vadd.f32 %v534_v39, %v2166_v51  ;;  %v532_v20 = vmul.f32 0.6931472, %v1698_v28 }
 0x20e   :  { %v1700_v55 = vpop.eup %1699  ;;  %v593_v14 = vmul.f32 1.442695, %v572_v36  ;;  %1719 = vlog2.f32 %v518_v5  ;;  %v516_v42 = vpop.xlane.xlu0 %515 }
 0x20f   :  { %v591_v43 = vmul.f32 1.442695, %v571_v34  ;;  %v574_v26 = vsub.f32 %v2027_v38, %v558_v21  ;;  %v557_v25 = vadd.f32 %v532_v20, %v2170_v60  ;;  %v538_v48 = vmul.f32 0.6931472, %v1700_v55  ;;  %v2462_v60 = vld [vmem:[%s2795_s2] ss:$0 sm:$0xff] }
 0x210   :  { %v1702_v62 = vpop.eup %1701  ;;  %1721 = vpow2.f32 %v593_v14  ;;  %v2471_v16 = vadd.f32 %v2462_v60, %v1949_v63  ;;  %v2491_v34 = vadd.f32 %v2462_v60, %v1970_v13 }
 0x211   :  { %1723 = vpow2.f32 %v591_v43  ;;  %v597_v27 = vmul.f32 1.442695, %v574_v26  ;;  %v573_v3 = vsub.f32 %v2039_v44, %v557_v25  ;;  %v560_v33 = vadd.f32 %v538_v48, %v2174_v4 }
 0x212   :  { %v536_v51 = vmul.f32 0.6931472, %v1702_v62  ;;  %1725 = vlog2.f32 %v516_v42  ;;  %v2500_v43 = vadd.f32 %v2462_v60, %v1982_v18  ;;  %v2512_v42 = vadd.f32 %v2462_v60, %v1994_v24 }
 0x213   :  { %v1704_v53 = vpop.eup %1703  ;;  %1727 = vpow2.f32 %v597_v27  ;;  %v595_v8 = vmul.f32 1.442695, %v573_v3  ;;  %v576_v46 = vsub.f32 %v2051_v50, %v560_v33 }
 0x214   :  { %v1706_v38 = vpop.eup %1705  ;;  %v559_v29 = vadd.f32 %v536_v51, %v2178_v19  ;;  %v542_v10 = vmul.f32 0.6931472, %v1704_v53  ;;  %v2475_v19 = vadd.f32 %v2462_v60, %v1952_v2  ;;  %v2487_v2 = vadd.f32 %v2462_v60, %v1958_v7 }
 0x215   :  { %v1708_v54 = vpop.eup %1707  ;;  %1729 = vpow2.f32 %v595_v8  ;;  %v601_v44 = vmul.f32 1.442695, %v576_v46  ;;  %v616_v4 = vsel %vm374_vm1, %v1706_v38, 0.0 }
 0x216   :  { %v1710_v59 = vpop.eup %1709  ;;  %v575_v22 = vsub.f32 %v2063_v56, %v559_v29  ;;  %v562_v50 = vadd.f32 %v542_v10, %v2184_v49  ;;  %v540_v37 = vmul.f32 0.6931472, %v1708_v54  ;;  %859 = vadd.xlane.f32.xlu1 %v616_v4  ;;  %1290 = vst [vmem:[#allocation2 + $0x8] sm:$0xff] %v616_v4  ;;  %v1242_v26 = vmul.f32 %v616_v4, %v2471_v16 }
 0x217   :  { %v1712_v9 = vpop.eup %1711  ;;  %1731 = vpow2.f32 %v601_v44  ;;  %1586 = vmatprep.mubr.msk.f32.mxu0 %vm374_vm1, %v1710_v59  ;;  %v615_v56 = vsel %vm374_vm1, %v1710_v59, 0.0 }
 0x218   :  { %v1714_v49 = vpop.eup %1713  ;;  %v599_v39 = vmul.f32 1.442695, %v575_v22  ;;  %v578_v28 = vsub.f32 %v2075_v1, %v562_v50  ;;  %v561_v36 = vadd.f32 %v540_v37, %v2190_v32  ;;  %v546_v5 = vmul.f32 0.6931472, %v1712_v9  ;;  %1587 = vmatmul.mubr.msk.f32.vlgmr.msra.gmra.mxu0 %vm374_vm1, %v1706_v38  ;;  %857 = vadd.xlane.f32.xlu0 %v615_v56  ;;  %1289 = vst [vmem:[#allocation2] sm:$0xff] %v615_v56 }
 0x219   :  { %v1716_v63 = vpop.eup %1715  ;;  %v1241_v21 = vmul.f32 %v615_v56, %v2475_v19  ;;  %v618_v1 = vsel %vm374_vm1, %v1714_v49, 0.0  ;;  %v2533_v22 = vadd.f32 %v2462_v60, %v2018_v35  ;;  %v1812_v37 = vmov 0  }
 0x21a   :  { %v1718_v32 = vpop.eup %1717  ;;  %1733 = vpow2.f32 %v599_v39  ;;  %v605_v20 = vmul.f32 1.442695, %v578_v28  ;;  %v577_v55 = vsub.f32 %v2087_v12, %v561_v36  ;;  %v564_v14 = vadd.f32 %v546_v5, %v2196_v15  ;;  %863 = vadd.xlane.f32.xlu1 %v618_v1  ;;  %1292 = vst [vmem:[#allocation2 + $0x18] sm:$0xff] %v618_v1  ;;  %1650 = vset.pattern.permute.xlu0 %v1812_v37 }
 0x21b   :  { %v1720_v7 = vpop.eup %1719  ;;  %v544_v13 = vmul.f32 0.6931472, %v1716_v63  ;;  %1589 = vmatprep.mubr.msk.f32.mxu0 %vm374_vm1, %v1718_v32  ;;  %v617_v25 = vsel %vm374_vm1, %v1718_v32, 0.0  ;;  %v1322_v27 = vadd.f32 %v1242_v26, %v1241_v21  ;;  %v1244_v38 = vmul.f32 %v618_v1, %v2487_v2  ;;  %1649 = vset.pattern.permute.xlu1 %v1812_v37 }
 0x21c   :  { %1735 = vpow2.f32 %v605_v20  ;;  %v603_v12 = vmul.f32 1.442695, %v577_v55  ;;  %v580_v15 = vsub.f32 %v2099_v23, %v564_v14  ;;  %v550_v48 = vmul.f32 0.6931472, %v1720_v7  ;;  %1590 = vmatmul.mubr.msk.f32.gmra.mxu0 %vm374_vm1, %v1714_v49  ;;  %861 = vadd.xlane.f32.xlu0 %v617_v25  ;;  %1291 = vst [vmem:[#allocation2 + $0x10] sm:$0xff] %v617_v25 }
 0x21d   :  { %v1722_v18 = vpop.eup %1721  ;;  %v563_v62 = vadd.f32 %v544_v13, %v2202_v58  ;;  %v1243_v3 = vmul.f32 %v617_v25, %v2491_v34  ;;  %v2549_v28 = vadd.f32 %v2462_v60, %v2006_v30  ;;  %v2564_v55 = vadd.f32 %v2462_v60, %v2030_v41 }
 0x21e   :  { %v1724_v33 = vpop.eup %1723  ;;  %1737 = vpow2.f32 %v603_v12  ;;  %v609_v51 = vmul.f32 1.442695, %v580_v15  ;;  %v566_v23 = vadd.f32 %v550_v48, %v2208_v0  ;;  %v620_v53 = vsel %vm374_vm1, %v1722_v18, 0.0 }
 0x21f   :  { %v1726_v8 = vpop.eup %1725  ;;  %v579_v46 = vsub.f32 %v2111_v31, %v563_v62  ;;  %v1323_v24 = vadd.f32 %v1322_v27, %v1243_v3  ;;  %867 = vadd.xlane.f32.xlu1 %v620_v53  ;;  %1294 = vst [vmem:[#allocation2 + $0x28] sm:$0xff] %v620_v53  ;;  %1592 = vmatprep.mubr.msk.f32.mxu0 %vm374_vm1, %v1724_v33  ;;  %v619_v58 = vsel %vm374_vm1, %v1724_v33, 0.0 }
 0x220   :  { %v1728_v29 = vpop.eup %1727  ;;  %1739 = vpow2.f32 %v609_v51  ;;  %v582_v0 = vsub.f32 %v2123_v40, %v566_v23  ;;  %v548_v10 = vmul.f32 0.6931472, %v1726_v8  ;;  %1593 = vmatmul.mubr.msk.f32.gmra.mxu0 %vm374_vm1, %v1722_v18  ;;  %865 = vadd.xlane.f32.xlu0 %v619_v58  ;;  %v1245_v31 = vmul.f32 %v619_v58, %v2512_v42  ;;  %1293 = vst [vmem:[#allocation2 + $0x20] sm:$0xff] %v619_v58 }
 0x221   :  { %v607_v54 = vmul.f32 1.442695, %v579_v46  ;;  %v1324_v44 = vadd.f32 %v1323_v24, %v1244_v38  ;;  %v622_v4 = vsel %vm374_vm1, %v1728_v29, 0.0  ;;  %v1246_v9 = vmul.f32 %v620_v53, %v2500_v43 }
 0x222   :  { %v1730_v59 = vpop.eup %1729  ;;  %v613_v50 = vmul.f32 1.442695, %v582_v0  ;;  %v565_v40 = vadd.f32 %v548_v10, %v2214_v11  ;;  %1296 = vst [vmem:[#allocation2 + $0x38] sm:$0xff] %v622_v4  ;;  %v1248_v1 = vmul.f32 %v622_v4, %v2549_v28  ;;  %v2573_v26 = vadd.f32 %v2462_v60, %v2066_v61 }
 0x223   :  { %1741 = vpow2.f32 %v607_v54  ;;  %v1325_v56 = vadd.f32 %v1324_v44, %v1245_v31  ;;  %871 = vadd.xlane.f32.xlu1 %v622_v4  ;;  %1595 = vmatprep.mubr.msk.f32.mxu1 %vm374_vm1, %v1730_v59  ;;  %v621_v35 = vsel %vm374_vm1, %v1730_v59, 0.0  ;;  %v2582_v48 = vadd.f32 %v2462_v60, %v2054_v52  ;;  %v2806_v31 = vld [vmem:[#allocation9_spill] sm:$0xff] }
 0x224   :  { %v1732_v49 = vpop.eup %1731  ;;  %1743 = vpow2.f32 %v613_v50  ;;  %v581_v11 = vsub.f32 %v2133_v45, %v565_v40  ;;  %1596 = vmatmul.mubr.msk.f32.vlgmr.msra.gmra.mxu1 %vm374_vm1, %v1728_v29  ;;  %869 = vadd.xlane.f32.xlu0 %v621_v35  ;;  %v1247_v39 = vmul.f32 %v621_v35, %v2533_v22  ;;  %1295 = vst [vmem:[#allocation2 + $0x30] sm:$0xff] %v621_v35  ;;  %v2805_v29 = vld [vmem:[#allocation10_spill] sm:$0xff] }
 0x225   :  { %v1326_v36 = vadd.f32 %v1325_v56, %v1246_v9  ;;  %v624_v5 = vsel %vm374_vm1, %v1732_v49, 0.0  ;;  %v2555_v45 = vadd.f32 %v2462_v60, %v2042_v47  ;;  %v2592_v52 = vadd.f32 %v2462_v60, %v2090_v17 }
 0x226   :  { %v611_v63 = vmul.f32 1.442695, %v581_v11  ;;  %1298 = vst [vmem:[#allocation2 + $0x48] sm:$0xff] %v624_v5  ;;  %v1250_v25 = vmul.f32 %v624_v5, %v2564_v55  ;;  %v2600_v8 = vadd.f32 %v2462_v60, %v2078_v6  ;;  %v2610_v6 = vadd.f32 %v2462_v60, %v2805_v29 }
 0x227   :  { %v1734_v21 = vpop.eup %1733  ;;  %v1327_v32 = vadd.f32 %v1326_v36, %v1247_v39  ;;  %875 = vadd.xlane.f32.xlu1 %v624_v5  ;;  %v2618_v54 = vadd.f32 %v2462_v60, %v2806_v31  ;;  %v842_v60 = vld [vmem:[%s2796_s3 + $0x8] sm:$0xff]  ;;  %v841_v36 = vld [vmem:[%s2796_s3] sm:$0xff] }
 0x228   :  { %1745 = vpow2.f32 %v611_v63  ;;  %1598 = vmatprep.mubr.msk.f32.mxu1 %vm374_vm1, %v1734_v21  ;;  %v623_v30 = vsel %vm374_vm1, %v1734_v21, 0.0  ;;  %v844_v21 = vld [vmem:[%s2796_s3 + $0x18] sm:$0xff] }
 0x229   :  { %v1736_v20 = vpop.eup %1735  ;;  %1599 = vmatmul.mubr.msk.f32.gmra.mxu1 %vm374_vm1, %v1732_v49  ;;  %v1328_v47 = vadd.f32 %v1327_v32, %v1248_v1  ;;  %873 = vadd.xlane.f32.xlu0 %v623_v30  ;;  %v1249_v14 = vmul.f32 %v623_v30, %v2555_v45  ;;  %1297 = vst [vmem:[#allocation2 + $0x40] sm:$0xff] %v623_v30 }
 0x22a   :  { %v626_v7 = vsel %vm374_vm1, %v1736_v20, 0.0 }
 0x22b   :  { %v1738_v13 = vpop.eup %1737  ;;  %v1329_v41 = vadd.f32 %v1328_v47, %v1249_v14  ;;  %879 = vadd.xlane.f32.xlu1 %v626_v7  ;;  %1300 = vst [vmem:[#allocation2 + $0x58] sm:$0xff] %v626_v7  ;;  %v1252_v27 = vmul.f32 %v626_v7, %v2582_v48 }
 0x22c   :  { %1601 = vmatprep.mubr.msk.f32.mxu1 %vm374_vm1, %v1738_v13  ;;  %v625_v12 = vsel %vm374_vm1, %v1738_v13, 0.0  ;;  %v846_v13 = vld [vmem:[%s2796_s3 + $0x28] sm:$0xff] }
 0x22d   :  { %v1740_v15 = vpop.eup %1739  ;;  %1602 = vmatmul.mubr.msk.f32.gmra.mxu1 %vm374_vm1, %v1736_v20  ;;  %v1330_v61 = vadd.f32 %v1329_v41, %v1250_v25  ;;  %877 = vadd.xlane.f32.xlu0 %v625_v12  ;;  %v1251_v18 = vmul.f32 %v625_v12, %v2573_v26  ;;  %1299 = vst [vmem:[#allocation2 + $0x50] sm:$0xff] %v625_v12  ;;  %v843_v20 = vld [vmem:[%s2796_s3 + $0x10] sm:$0xff] }
 0x22e   :  { %v628_v62 = vsel %vm374_vm1, %v1740_v15, 0.0 }
 0x22f   :  { %v1331_v3 = vadd.f32 %v1330_v61, %v1251_v18  ;;  %883 = vadd.xlane.f32.xlu1 %v628_v62  ;;  %1302 = vst [vmem:[#allocation2 + $0x68] sm:$0xff] %v628_v62  ;;  %v1254_v38 = vmul.f32 %v628_v62, %v2600_v8  ;;  %v850_v18 = vld [vmem:[%s2796_s3 + $0x48] sm:$0xff] }
 0x230   :  { %v1742_v33 = vpop.eup %1741 }
 0x231   :  { %v1744_v51 = vpop.eup %1743  ;;  %1604 = vmatprep.mubr.msk.f32.mxu1 %vm374_vm1, %v1742_v33  ;;  %v627_v23 = vsel %vm374_vm1, %v1742_v33, 0.0  ;;  %v1332_v53 = vadd.f32 %v1331_v3, %v1252_v27  ;;  %v848_v3 = vld [vmem:[%s2796_s3 + $0x38] sm:$0xff] }
 0x232   :  { %1605 = vmatmul.mubr.msk.f32.gmra.mxu1 %vm374_vm1, %v1740_v15  ;;  %881 = vadd.xlane.f32.xlu0 %v627_v23  ;;  %v1253_v46 = vmul.f32 %v627_v23, %v2592_v52  ;;  %1301 = vst [vmem:[#allocation2 + $0x60] sm:$0xff] %v627_v23  ;;  %v630_v17 = vsel %vm374_vm1, %v1744_v51, 0.0  ;;  %v845_v15 = vld [vmem:[%s2796_s3 + $0x20] sm:$0xff] }
 0x233   :  { %887 = vadd.xlane.f32.xlu1 %v630_v17  ;;  %1304 = vst [vmem:[#allocation2 + $0x78] sm:$0xff] %v630_v17  ;;  %v1256_v4 = vmul.f32 %v630_v17, %v2618_v54  ;;  %v847_v17 = vld [vmem:[%s2796_s3 + $0x30] sm:$0xff] }
 0x234   :  { %v1333_v24 = vadd.f32 %v1332_v53, %v1253_v46 }
 0x235   :  { %v1746_v58 = vpop.eup %1745 }
 0x236   :  { %1607 = vmatprep.mubr.msk.f32.mxu1 %vm374_vm1, %v1746_v58  ;;  %v629_v0 = vsel %vm374_vm1, %v1746_v58, 0.0  ;;  %v1334_v10 = vadd.f32 %v1333_v24, %v1254_v38  ;;  %v854_v24 = vld [vmem:[%s2796_s3 + $0x68] sm:$0xff] }
 0x237   :  { %1608 = vmatmul.mubr.msk.f32.gmra.mxu1 %vm374_vm1, %v1744_v51  ;;  %885 = vadd.xlane.f32.xlu0 %v629_v0  ;;  %v1255_v44 = vmul.f32 %v629_v0, %v2610_v6  ;;  %1303 = vst [vmem:[#allocation2 + $0x70] sm:$0xff] %v629_v0  ;;  %v852_v51 = vld [vmem:[%s2796_s3 + $0x58] sm:$0xff]  ;;  %v849_v0 = vld [vmem:[%s2796_s3 + $0x40] sm:$0xff] }
 0x239   :  { %v1335_v59 = vadd.f32 %v1334_v10, %v1255_v44  ;;  %v856_v44 = vld [vmem:[%s2796_s3 + $0x78] sm:$0xff] }
 0x23b   :  { %v1336_v50 = vadd.f32 %v1335_v59, %v1256_v4 }
 0x23d   :  { %v1337_v40 = vrot.slane %v1336_v50, 4 }
 0x23f   :  { %v1338_v9 = vadd.f32 %v1337_v40, %v1336_v50  ;;  %v851_v50 = vld [vmem:[%s2796_s3 + $0x50] sm:$0xff] }
 0x241   :  { %v1339_v56 = vrot.slane %v1338_v9, 2 }
 0x243   :  { %v1340_v35 = vadd.f32 %v1339_v56, %v1338_v9 }
 0x245   :  { %v1341_v49 = vrot.slane %v1340_v35, 1 }
 0x247   :  { %v1342_v11 = vadd.f32 %v1341_v49, %v1340_v35  ;;  %v853_v35 = vld [vmem:[%s2796_s3 + $0x60] sm:$0xff] }
 0x249   :  { %1343 = vst [vmem:[#allocation4] sm:$0x1] %v1342_v11  ;;  %v855_v11 = vld [vmem:[%s2796_s3 + $0x70] sm:$0xff]  ;;  %s1813_s3 = smov [#allocation4]  }
 0x24a   :  { %s1386_s18 = sshll.u32 %s1813_s3, 4  ;;  %s1387_s18 = int_to_ptr.vmem [resolvable:$true] %s1386_s18 }
 0x24b   :  { %s1747_s21 = scalar_lea.vmem %s1387_s18, 16  ;;  %s1751_s22 = scalar_lea.vmem %s1387_s18, 32 }
 0x24c   :  { %p1748_p0 = scmp.ne.s32.totalorder %s1387_s18, %s1747_s21  ;;  %p1752_p1 = scmp.lt.s32.totalorder %s1387_s18, %s1387_s18 }
 0x24d   :  { %p1753_p2 = scmp.lt.s32.totalorder %s1751_s22, %s1747_s21 }
 0x24f   :  { %p1754_p3 = por %p1753_p2, %p1752_p1 }
 0x251   :  { %p1755_p4 = pnand %p1754_p3, %p1748_p0 }
 0x29f   :  { %v860_v39 = vpop.xlane.xlu1 %859 }
 0x2a0   :  { %v890_v5 = vmul.f32 %v860_v39, %v842_v60 }
 0x2a1   :  { %v858_v63 = vpop.xlane.xlu0 %857 }
 0x2a2   :  { %v889_v1 = vmul.f32 %v858_v63, %v841_v36  ;;  %912 = vperm.xlu1 %1649, %v890_v5  }
 0x2a3   :  { %v864_v32 = vpop.xlane.xlu1 %863 }
 0x2a4   :  { %v892_v30 = vmul.f32 %v864_v32, %v844_v21  ;;  %907 = vperm.xlu0 %1650, %v889_v1  }
 0x2a5   :  { %v862_v47 = vpop.xlane.xlu0 %861 }
 0x2a6   :  { %922 = vperm.xlu1 %1649, %v892_v30   ;;  %v891_v14 = vmul.f32 %v862_v47, %v843_v20 }
 0x2a8   :  { %v868_v7 = vpop.xlane.xlu1 %867 }
 0x2a9   :  { %v866_v25 = vpop.xlane.xlu0 %865  ;;  %v894_v41 = vmul.f32 %v868_v7, %v846_v13 }
 0x2aa   :  { %917 = vperm.xlu1 %1649, %v891_v14   ;;  %v893_v62 = vmul.f32 %v866_v25, %v845_v15 }
 0x2ac   :  { %v872_v12 = vpop.xlane.xlu1 %871 }
 0x2ad   :  { %v870_v61 = vpop.xlane.xlu0 %869  ;;  %v896_v53 = vmul.f32 %v872_v12, %v848_v3 }
 0x2ae   :  { %932 = vperm.xlu1 %1649, %v894_v41   ;;  %v895_v58 = vmul.f32 %v870_v61, %v847_v17 }
 0x2b0   :  { %v876_v27 = vpop.xlane.xlu1 %875 }
 0x2b1   :  { %v898_v33 = vmul.f32 %v876_v27, %v850_v18 }
 0x2b2   :  { %927 = vperm.xlu1 %1649, %v893_v62   ;;  %v874_v23 = vpop.xlane.xlu0 %873 }
 0x2b3   :  { %952 = vperm.xlu0 %1650, %v898_v33   ;;  %v897_v4 = vmul.f32 %v874_v23, %v849_v0 }
 0x2b4   :  { %v880_v46 = vpop.xlane.xlu1 %879 }
 0x2b5   :  { %v900_v38 = vmul.f32 %v880_v46, %v852_v51 }
 0x2b6   :  { %942 = vperm.xlu1 %1649, %v896_v53   ;;  %v878_v10 = vpop.xlane.xlu0 %877 }
 0x2b7   :  { %962 = vperm.xlu0 %1650, %v900_v38   ;;  %v899_v56 = vmul.f32 %v878_v10, %v851_v50 }
 0x2b8   :  { %v884_v29 = vpop.xlane.xlu1 %883 }
 0x2b9   :  { %v902_v31 = vmul.f32 %v884_v29, %v854_v24 }
 0x2ba   :  { %937 = vperm.xlu1 %1649, %v895_v58  }
 0x2bb   :  { %972 = vperm.xlu0 %1650, %v902_v31   ;;  %v882_v9 = vpop.xlane.xlu0 %881 }
 0x2bc   :  { %v888_v59 = vpop.xlane.xlu1 %887  ;;  %v901_v49 = vmul.f32 %v882_v9, %v853_v35 }
 0x2bd   :  { %v904_v40 = vmul.f32 %v888_v59, %v856_v44 }
 0x2be   :  { %947 = vperm.xlu1 %1649, %v897_v4  }
 0x2bf   :  { %982 = vperm.xlu0 %1650, %v904_v40  }
 0x2c0   :  { %v886_v60 = vpop.xlane.xlu0 %885 }
 0x2c1   :  { %v903_v39 = vmul.f32 %v886_v60, %v855_v11 }
 0x2c2   :  { %957 = vperm.xlu1 %1649, %v899_v56  }
 0x2c6   :  { %967 = vperm.xlu1 %1649, %v901_v49  }
 0x2ca   :  { %977 = vperm.xlu1 %1649, %v903_v39  }
 0x2d8   :  { %v1588_v36 = vpop.f32.mrf.mxu0 }
 0x2da   :  { %v762_v5 = vpop.f32.mrf.mxu0 }
 0x2dc   :  { %v1591_v20 = vpop.f32.mrf.mxu0 }
 0x2de   :  { %v772_v15 = vpop.f32.mrf.mxu0 }
 0x2e0   :  { %v1594_v51 = vpop.f32.mrf.mxu0 }
 0x2e2   :  { %v782_v29 = vpop.f32.mrf.mxu0 }
 0x2e4   :  { %v1597_v24 = vpop.f32.mrf.mxu1 }
 0x2e6   :  { %v792_v59 = vpop.f32.mrf.mxu1 }
 0x2e9   :  { %v1600_v11 = vpop.f32.mrf.mxu1 }
 0x31d   :  { %v913_v63 = vpop.permute.xlu1 %912 }
 0x31e   :  { %vm986_vm1 = vcmp.le.f32.partialorder %v1588_v36, %v913_v63 }
 0x31f   :  { %v1002_v21 = vsel %vm986_vm1, 1, %v1812_v37  ;;  %v908_v1 = vpop.permute.xlu0 %907 }
 0x320   :  { %vm985_vm3 = vcmp.le.f32.partialorder %v762_v5, %v908_v1  ;;  %v1030_v32 = vshrl.u32 %v1002_v21, 16  ;;  %v1029_v30 = vand.u32 65535, %v1002_v21 }
 0x321   :  { %v1001_v47 = vsel %vm985_vm3, 1, %v1812_v37  ;;  %v923_v14 = vpop.permute.xlu1 %922 }
 0x322   :  { %vm988_vm4 = vcmp.le.f32.partialorder %v1591_v20, %v923_v14  ;;  %v1032_v7 = vcvt.s32.f32 %v1030_v32  ;;  %v1031_v13 = vcvt.s32.f32 %v1029_v30  ;;  %v1018_v25 = vshrl.u32 %v1001_v47, 16  ;;  %v802_v32 = vpop.f32.mrf.mxu1 }
 0x323   :  { %v1004_v41 = vsel %vm988_vm4, 1, %v1812_v37  ;;  %v1017_v12 = vand.u32 65535, %v1001_v47 }
 0x324   :  { %1035 = vadd.xlane.f32.xlu0 %v1032_v7  ;;  %1033 = vadd.xlane.f32.xlu1 %v1031_v13  ;;  %v1020_v18 = vcvt.s32.f32 %v1018_v25  ;;  %v1053_v27 = vand.u32 65535, %v1004_v41  ;;  %v1054_v3 = vshrl.u32 %v1004_v41, 16  ;;  %v1603_v25 = vpop.f32.mrf.mxu1 }
 0x325   :  { %v918_v61 = vpop.permute.xlu1 %917  ;;  %v1019_v62 = vcvt.s32.f32 %v1017_v12 }
 0x326   :  { %vm987_vm5 = vcmp.le.f32.partialorder %v772_v15, %v918_v61  ;;  %v1055_v46 = vcvt.s32.f32 %v1053_v27  ;;  %v1056_v17 = vcvt.s32.f32 %v1054_v3  ;;  %v812_v27 = vpop.f32.mrf.mxu1 }
 0x327   :  { %v1003_v33 = vsel %vm987_vm5, 1, %v1812_v37 }
 0x328   :  { %1023 = vadd.xlane.f32.xlu1 %v1020_v18  ;;  %1021 = vadd.xlane.f32.xlu0 %v1019_v62  ;;  %v1041_v53 = vand.u32 65535, %v1003_v33  ;;  %v1042_v38 = vshrl.u32 %v1003_v33, 16 }
 0x329   :  { %v933_v23 = vpop.permute.xlu1 %932 }
 0x32a   :  { %vm990_vm6 = vcmp.le.f32.partialorder %v1594_v51, %v933_v23  ;;  %v1043_v10 = vcvt.s32.f32 %v1041_v53  ;;  %v1044_v31 = vcvt.s32.f32 %v1042_v38 }
 0x32b   :  { %v1006_v58 = vsel %vm990_vm6, 1, %v1812_v37 }
 0x32c   :  { %1057 = vadd.xlane.f32.xlu1 %v1055_v46  ;;  %1059 = vadd.xlane.f32.xlu0 %v1056_v17  ;;  %v1077_v44 = vand.u32 65535, %v1006_v58  ;;  %v1078_v4 = vshrl.u32 %v1006_v58, 16  ;;  %v1606_v17 = vpop.f32.mrf.mxu1 }
 0x32d   :  { %v928_v0 = vpop.permute.xlu1 %927 }
 0x32e   :  { %vm989_vm7 = vcmp.le.f32.partialorder %v782_v29, %v928_v0  ;;  %v1079_v56 = vcvt.s32.f32 %v1077_v44  ;;  %v1080_v35 = vcvt.s32.f32 %v1078_v4  ;;  %v953_v39 = vpop.permute.xlu0 %952 }
 0x32f   :  { %v1005_v50 = vsel %vm989_vm7, 1, %v1812_v37  ;;  %vm994_vm10 = vcmp.le.f32.partialorder %v1600_v11, %v953_v39 }
 0x330   :  { %1045 = vadd.xlane.f32.xlu1 %v1043_v10  ;;  %1047 = vadd.xlane.f32.xlu0 %v1044_v31  ;;  %v1065_v9 = vand.u32 65535, %v1005_v50  ;;  %v1066_v49 = vshrl.u32 %v1005_v50, 16  ;;  %v1010_v41 = vsel %vm994_vm10, 1, %v1812_v37  ;;  %v822_v31 = vpop.f32.mrf.mxu1 }
 0x331   :  { %v943_v40 = vpop.permute.xlu1 %942  ;;  %v1125_v15 = vand.u32 65535, %v1010_v41  ;;  %v1126_v62 = vshrl.u32 %v1010_v41, 16 }
 0x332   :  { %vm992_vm8 = vcmp.le.f32.partialorder %v1597_v24, %v943_v40  ;;  %v1067_v5 = vcvt.s32.f32 %v1065_v9  ;;  %v1068_v21 = vcvt.s32.f32 %v1066_v49  ;;  %v963_v12 = vpop.permute.xlu0 %962 }
 0x333   :  { %v1008_v60 = vsel %vm992_vm8, 1, %v1812_v37  ;;  %vm996_vm12 = vcmp.le.f32.partialorder %v1603_v25, %v963_v12  ;;  %v1127_v51 = vcvt.s32.f32 %v1125_v15  ;;  %v1128_v53 = vcvt.s32.f32 %v1126_v62 }
 0x334   :  { %1081 = vadd.xlane.f32.xlu1 %v1079_v56  ;;  %1083 = vadd.xlane.f32.xlu0 %v1080_v35  ;;  %v1101_v63 = vand.u32 65535, %v1008_v60  ;;  %v1102_v1 = vshrl.u32 %v1008_v60, 16  ;;  %v1012_v38 = vsel %vm996_vm12, 1, %v1812_v37  ;;  %v1609_v56 = vpop.f32.mrf.mxu1 }
 0x335   :  { %v938_v36 = vpop.permute.xlu1 %937  ;;  %v1149_v58 = vand.u32 65535, %v1012_v38  ;;  %v1150_v10 = vshrl.u32 %v1012_v38, 16 }
 0x336   :  { %vm991_vm9 = vcmp.le.f32.partialorder %v792_v59, %v938_v36  ;;  %v1103_v47 = vcvt.s32.f32 %v1101_v63  ;;  %v1104_v7 = vcvt.s32.f32 %v1102_v1  ;;  %v973_v24 = vpop.permute.xlu0 %972 }
 0x337   :  { %v1007_v30 = vsel %vm991_vm9, 1, %v1812_v37  ;;  %vm998_vm14 = vcmp.le.f32.partialorder %v1606_v17, %v973_v24  ;;  %v1151_v59 = vcvt.s32.f32 %v1149_v58  ;;  %v1152_v40 = vcvt.s32.f32 %v1150_v10 }
 0x338   :  { %1069 = vadd.xlane.f32.xlu1 %v1067_v5  ;;  %1071 = vadd.xlane.f32.xlu0 %v1068_v21  ;;  %v1089_v14 = vand.u32 65535, %v1007_v30  ;;  %v1090_v13 = vshrl.u32 %v1007_v30, 16  ;;  %v1014_v35 = vsel %vm998_vm14, 1, %v1812_v37  ;;  %v832_v5 = vpop.f32.mrf.mxu1 }
 0x339   :  { %v948_v20 = vpop.permute.xlu1 %947  ;;  %v1173_v11 = vand.u32 65535, %v1014_v35  ;;  %v1174_v60 = vshrl.u32 %v1014_v35, 16 }
 0x33a   :  { %vm993_vm11 = vcmp.le.f32.partialorder %v802_v32, %v948_v20  ;;  %v1091_v61 = vcvt.s32.f32 %v1089_v14  ;;  %v1092_v18 = vcvt.s32.f32 %v1090_v13  ;;  %v983_v21 = vpop.permute.xlu0 %982 }
 0x33b   :  { %v1009_v3 = vsel %vm993_vm11, 1, %v1812_v37  ;;  %v1175_v1 = vcvt.s32.f32 %v1173_v11  ;;  %v1176_v32 = vcvt.s32.f32 %v1174_v60  ;;  %vm1000_vm2 = vcmp.le.f32.partialorder %v1609_v56, %v983_v21 }
 0x33c   :  { %1105 = vadd.xlane.f32.xlu1 %v1103_v47  ;;  %1107 = vadd.xlane.f32.xlu0 %v1104_v7  ;;  %v1113_v23 = vand.u32 65535, %v1009_v3  ;;  %v1114_v46 = vshrl.u32 %v1009_v3, 16  ;;  %v1016_v41 = vsel %vm1000_vm2, 1, %v1812_v37 }
 0x33d   :  { %v958_v33 = vpop.permute.xlu1 %957  ;;  %v1197_v12 = vand.u32 65535, %v1016_v41  ;;  %v1198_v15 = vshrl.u32 %v1016_v41, 16 }
 0x33e   :  { %vm995_vm13 = vcmp.le.f32.partialorder %v812_v27, %v958_v33  ;;  %v1115_v29 = vcvt.s32.f32 %v1113_v23  ;;  %v1116_v0 = vcvt.s32.f32 %v1114_v46 }
 0x33f   :  { %v1011_v44 = vsel %vm995_vm13, 1, %v1812_v37  ;;  %v1199_v62 = vcvt.s32.f32 %v1197_v12  ;;  %v1200_v27 = vcvt.s32.f32 %v1198_v15 }
 0x340   :  { %1093 = vadd.xlane.f32.xlu1 %v1091_v61  ;;  %1095 = vadd.xlane.f32.xlu0 %v1092_v18  ;;  %v1137_v50 = vand.u32 65535, %v1011_v44  ;;  %v1138_v9 = vshrl.u32 %v1011_v44, 16 }
 0x341   :  { %v968_v4 = vpop.permute.xlu1 %967 }
 0x342   :  { %vm997_vm15 = vcmp.le.f32.partialorder %v822_v31, %v968_v4  ;;  %v1139_v39 = vcvt.s32.f32 %v1137_v50  ;;  %v1140_v36 = vcvt.s32.f32 %v1138_v9 }
 0x343   :  { %v1013_v63 = vsel %vm997_vm15, 1, %v1812_v37 }
 0x344   :  { %1131 = vadd.xlane.f32.xlu0 %v1128_v53  ;;  %1129 = vadd.xlane.f32.xlu1 %v1127_v51  ;;  %v1161_v30 = vand.u32 65535, %v1013_v63  ;;  %v1162_v20 = vshrl.u32 %v1013_v63, 16 }
 0x345   :  { %v978_v49 = vpop.permute.xlu1 %977 }
 0x346   :  { %vm999_vm0 = vcmp.le.f32.partialorder %v832_v5, %v978_v49  ;;  %v1163_v14 = vcvt.s32.f32 %v1161_v30  ;;  %v1164_v7 = vcvt.s32.f32 %v1162_v20 }
 0x347   :  { %v1015_v47 = vsel %vm999_vm0, 1, %v1812_v37 }
 0x348   :  { %1119 = vadd.xlane.f32.xlu0 %v1116_v0  ;;  %1117 = vadd.xlane.f32.xlu1 %v1115_v29  ;;  %v1185_v13 = vand.u32 65535, %v1015_v47  ;;  %v1186_v25 = vshrl.u32 %v1015_v47, 16 }
 0x34a   :  { %v1187_v61 = vcvt.s32.f32 %v1185_v13  ;;  %v1188_v18 = vcvt.s32.f32 %v1186_v25 }
 0x34c   :  { %1155 = vadd.xlane.f32.xlu0 %v1152_v40  ;;  %1153 = vadd.xlane.f32.xlu1 %v1151_v59 }
 0x350   :  { %1143 = vadd.xlane.f32.xlu0 %v1140_v36  ;;  %1141 = vadd.xlane.f32.xlu1 %v1139_v39 }
 0x354   :  { %1179 = vadd.xlane.f32.xlu0 %v1176_v32  ;;  %1177 = vadd.xlane.f32.xlu1 %v1175_v1 }
 0x358   :  { %1167 = vadd.xlane.f32.xlu0 %v1164_v7  ;;  %1165 = vadd.xlane.f32.xlu1 %v1163_v14 }
 0x35c   :  { %1191 = vadd.xlane.f32.xlu0 %v1188_v18  ;;  %1189 = vadd.xlane.f32.xlu1 %v1187_v61 }
 0x360   :  { %1203 = vadd.xlane.f32.xlu0 %v1200_v27  ;;  %1201 = vadd.xlane.f32.xlu1 %v1199_v62 }
 0x361   :  { %1758 = shalt.err (!%p1755_p4)
}
 0x362   :  { %1389 = dma.vmem_to_hbm [thread:$0]  %s1387_s18, 16, %s2799_s6, [#allocation5]  }
 0x363   :  { %s1767_s25 = scalar_lea.vmem %s1372_s20, 2048  ;;  %p1772_p6 = scmp.lt.s32.totalorder %s1372_s20, %s1372_s20 }
 0x364   :  { %p1768_p5 = scmp.ne.s32.totalorder %s1372_s20, %s1767_s25  ;;  %p1773_p7 = scmp.lt.s32.totalorder %s1767_s25, %s1767_s25 }
 0x366   :  { %p1774_p8 = por %p1773_p7, %p1772_p6 }
 0x368   :  { %p1775_p9 = pnand %p1774_p8, %p1768_p5 }
 0x36a   :  { %1778 = shalt.err (!%p1775_p9)
}
 0x36b   :  { %s1815_s26 = smov 128   ;;  %s1816_s27 = smov 8   ;;  %vm1305_vm1 = vcmask 7168  }
 0x36c   :  { %1377 = dma.vmem_to_hbm [thread:$0]  %s1372_s20, 2048, %s2797_s4, [#allocation3], %s1815_s26, %s1815_s26, %s1816_s27  }
 0x36d   :  { %s1817_s8 = smov [#allocation6]  }
 0x36e   :  { %s1396_s9 = sshll.u32 %s1817_s8, 4  ;;  %s1397_s9 = int_to_ptr.vmem [resolvable:$true] %s1396_s9 }
 0x36f   :  { %s1787_s10 = scalar_lea.vmem %s1397_s9, 16  ;;  %s1791_s0 = scalar_lea.vmem %s1397_s9, 32 }
 0x370   :  { %p1788_p10 = scmp.ne.s32.totalorder %s1397_s9, %s1787_s10  ;;  %p1792_p11 = scmp.lt.s32.totalorder %s1397_s9, %s1397_s9 }
 0x371   :  { %p1793_p12 = scmp.lt.s32.totalorder %s1791_s0, %s1787_s10 }
 0x373   :  { %p1794_p13 = por %p1793_p12, %p1792_p11 }
 0x375   :  { %p1795_p0 = pnand %p1794_p13, %p1788_p10 }
 0x3ad   :  { %v1034_v37 = vpop.xlane.xlu1 %1033  ;;  %v1036_v3 = vpop.xlane.xlu0 %1035 }
 0x3ae   :  { %v1038_v33 = vcvt.f32.s32 %v1036_v3  ;;  %v1037_v51 = vcvt.f32.s32 %v1034_v37 }
 0x3b0   :  { %v1039_v23 = vshll.u32 %v1038_v33, 16 }
 0x3b1   :  { %v1024_v53 = vpop.xlane.xlu1 %1023  ;;  %v1022_v46 = vpop.xlane.xlu0 %1021 }
 0x3b2   :  { %v1040_v17 = vadd.s32 %v1039_v23, %v1037_v51  ;;  %v1026_v38 = vcvt.f32.s32 %v1024_v53  ;;  %v1025_v58 = vcvt.f32.s32 %v1022_v46 }
 0x3b4   :  { %vm1211_vm3 = vcmp.lt.s32.totalorder %v1040_v17, 2  ;;  %v1027_v24 = vshll.u32 %v1026_v38, 16 }
 0x3b5   :  { %v1212_v29 = vsel %vm1211_vm3, %v1040_v17, 2  ;;  %v1058_v0 = vpop.xlane.xlu1 %1057  ;;  %v1060_v10 = vpop.xlane.xlu0 %1059 }
 0x3b6   :  { %1307 = vst.msk [vmem:[%s2798_s5 + $0x8] sm:$0xff] %vm1305_vm1, %v1212_v29  ;;  %v1028_v31 = vadd.s32 %v1027_v24, %v1025_v58  ;;  %v1062_v44 = vcvt.f32.s32 %v1060_v10  ;;  %v1061_v4 = vcvt.f32.s32 %v1058_v0  ;;  %vm1258_vm9 = vcmp.eq.s32.totalorder %v1942_v57, %v1212_v29 }
 0x3b7   :  { %v1274_v23 = vsel %vm1258_vm9, %v2471_v16, 0.0 }
 0x3b8   :  { %vm1209_vm4 = vcmp.lt.s32.totalorder %v1028_v31, 2  ;;  %v1063_v59 = vshll.u32 %v1062_v44, 16 }
 0x3b9   :  { %v1210_v50 = vsel %vm1209_vm4, %v1028_v31, 2  ;;  %v1046_v40 = vpop.xlane.xlu1 %1045  ;;  %v1048_v9 = vpop.xlane.xlu0 %1047 }
 0x3ba   :  { %1306 = vst.msk [vmem:[%s2798_s5] sm:$0xff] %vm1305_vm1, %v1210_v50  ;;  %v1064_v56 = vadd.s32 %v1063_v59, %v1061_v4  ;;  %v1050_v35 = vcvt.f32.s32 %v1048_v9  ;;  %v1049_v49 = vcvt.f32.s32 %v1046_v40  ;;  %vm1257_vm8 = vcmp.eq.s32.totalorder %v1942_v57, %v1210_v50 }
 0x3bb   :  { %v1273_v18 = vsel %vm1257_vm8, %v2475_v19, 0.0 }
 0x3bc   :  { %vm1215_vm5 = vcmp.lt.s32.totalorder %v1064_v56, 2  ;;  %v1051_v11 = vshll.u32 %v1050_v35, 16  ;;  %v1344_v17 = vadd.f32 %v1274_v23, %v1273_v18 }
 0x3bd   :  { %v1216_v60 = vsel %vm1215_vm5, %v1064_v56, 2  ;;  %v1082_v39 = vpop.xlane.xlu1 %1081  ;;  %v1084_v36 = vpop.xlane.xlu0 %1083 }
 0x3be   :  { %1309 = vst.msk [vmem:[%s2798_s5 + $0x18] sm:$0xff] %vm1305_vm1, %v1216_v60  ;;  %v1052_v5 = vadd.s32 %v1051_v11, %v1049_v49  ;;  %v1086_v63 = vcvt.f32.s32 %v1084_v36  ;;  %v1085_v21 = vcvt.f32.s32 %v1082_v39  ;;  %vm1260_vm12 = vcmp.eq.s32.totalorder %v1942_v57, %v1216_v60 }
 0x3c0   :  { %vm1213_vm6 = vcmp.lt.s32.totalorder %v1052_v5, 2  ;;  %v1087_v1 = vshll.u32 %v1086_v63, 16 }
 0x3c1   :  { %v1214_v32 = vsel %vm1213_vm6, %v1052_v5, 2  ;;  %v1070_v30 = vpop.xlane.xlu1 %1069  ;;  %v1072_v20 = vpop.xlane.xlu0 %1071 }
 0x3c2   :  { %1308 = vst.msk [vmem:[%s2798_s5 + $0x10] sm:$0xff] %vm1305_vm1, %v1214_v32  ;;  %v1088_v47 = vadd.s32 %v1087_v1, %v1085_v21  ;;  %v1074_v14 = vcvt.f32.s32 %v1072_v20  ;;  %v1073_v7 = vcvt.f32.s32 %v1070_v30  ;;  %vm1259_vm10 = vcmp.eq.s32.totalorder %v1942_v57, %v1214_v32 }
 0x3c3   :  { %v1275_v53 = vsel %vm1259_vm10, %v2491_v34, 0.0  ;;  %v1276_v34 = vsel %vm1260_vm12, %v2487_v2, 0.0 }
 0x3c4   :  { %vm1219_vm7 = vcmp.lt.s32.totalorder %v1088_v47, 2  ;;  %v1075_v13 = vshll.u32 %v1074_v14, 16  ;;  %v1345_v29 = vadd.f32 %v1344_v17, %v1275_v53 }
 0x3c5   :  { %v1220_v25 = vsel %vm1219_vm7, %v1088_v47, 2  ;;  %v1106_v41 = vpop.xlane.xlu1 %1105  ;;  %v1108_v12 = vpop.xlane.xlu0 %1107 }
 0x3c6   :  { %1311 = vst.msk [vmem:[%s2798_s5 + $0x28] sm:$0xff] %vm1305_vm1, %v1220_v25  ;;  %v1076_v15 = vadd.s32 %v1075_v13, %v1073_v7  ;;  %v1110_v61 = vcvt.f32.s32 %v1108_v12  ;;  %v1109_v27 = vcvt.f32.s32 %v1106_v41  ;;  %v1346_v9 = vadd.f32 %v1345_v29, %v1276_v34 }
 0x3c7   :  { %vm1262_vm0 = vcmp.eq.s32.totalorder %v1942_v57, %v1220_v25 }
 0x3c8   :  { %vm1217_vm11 = vcmp.lt.s32.totalorder %v1076_v15, 2  ;;  %v1111_v37 = vshll.u32 %v1110_v61, 16  ;;  %v1278_v5 = vsel %vm1262_vm0, %v2500_v43, 0.0 }
 0x3c9   :  { %v1218_v62 = vsel %vm1217_vm11, %v1076_v15, 2  ;;  %v1094_v3 = vpop.xlane.xlu1 %1093  ;;  %v1096_v33 = vpop.xlane.xlu0 %1095 }
 0x3ca   :  { %1310 = vst.msk [vmem:[%s2798_s5 + $0x20] sm:$0xff] %vm1305_vm1, %v1218_v62  ;;  %v1098_v51 = vcvt.f32.s32 %v1096_v33  ;;  %v1112_v46 = vadd.s32 %v1111_v37, %v1109_v27  ;;  %v1097_v38 = vcvt.f32.s32 %v1094_v3  ;;  %vm1261_vm14 = vcmp.eq.s32.totalorder %v1942_v57, %v1218_v62 }
 0x3cb   :  { %v1277_v31 = vsel %vm1261_vm14, %v2512_v42, 0.0 }
 0x3cc   :  { %v1099_v24 = vshll.u32 %v1098_v51, 16  ;;  %vm1223_vm13 = vcmp.lt.s32.totalorder %v1112_v46, 2  ;;  %v1347_v49 = vadd.f32 %v1346_v9, %v1277_v31 }
 0x3cd   :  { %v1130_v19 = vpop.xlane.xlu1 %1129  ;;  %v1132_v58 = vpop.xlane.xlu0 %1131  ;;  %v1224_v0 = vsel %vm1223_vm13, %v1112_v46, 2 }
 0x3ce   :  { %v1100_v10 = vadd.s32 %v1099_v24, %v1097_v38  ;;  %1313 = vst.msk [vmem:[%s2798_s5 + $0x38] sm:$0xff] %vm1305_vm1, %v1224_v0  ;;  %v1134_v16 = vcvt.f32.s32 %v1132_v58  ;;  %v1133_v4 = vcvt.f32.s32 %v1130_v19  ;;  %v1348_v1 = vadd.f32 %v1347_v49, %v1278_v5 }
 0x3cf   :  { %vm1264_vm5 = vcmp.eq.s32.totalorder %v1942_v57, %v1224_v0 }
 0x3d0   :  { %vm1221_vm15 = vcmp.lt.s32.totalorder %v1100_v10, 2  ;;  %v1135_v59 = vshll.u32 %v1134_v16, 16  ;;  %v1280_v41 = vsel %vm1264_vm5, %v2549_v28, 0.0 }
 0x3d1   :  { %v1222_v44 = vsel %vm1221_vm15, %v1100_v10, 2  ;;  %v1118_v50 = vpop.xlane.xlu1 %1117  ;;  %v1120_v40 = vpop.xlane.xlu0 %1119 }
 0x3d2   :  { %1312 = vst.msk [vmem:[%s2798_s5 + $0x30] sm:$0xff] %vm1305_vm1, %v1222_v44  ;;  %v1122_v56 = vcvt.f32.s32 %v1120_v40  ;;  %v1136_v35 = vadd.s32 %v1135_v59, %v1133_v4  ;;  %vm1263_vm2 = vcmp.eq.s32.totalorder %v1942_v57, %v1222_v44  ;;  %v1121_v2 = vcvt.f32.s32 %v1118_v50 }
 0x3d3   :  { %v1279_v63 = vsel %vm1263_vm2, %v2533_v22, 0.0 }
 0x3d4   :  { %v1123_v42 = vshll.u32 %v1122_v56, 16  ;;  %vm1227_vm3 = vcmp.lt.s32.totalorder %v1136_v35, 2  ;;  %v1349_v7 = vadd.f32 %v1348_v1, %v1279_v63 }
 0x3d5   :  { %v1154_v11 = vpop.xlane.xlu1 %1153  ;;  %v1156_v60 = vpop.xlane.xlu0 %1155  ;;  %v1228_v39 = vsel %vm1227_vm3, %v1136_v35, 2 }
 0x3d6   :  { %v1124_v36 = vadd.s32 %v1123_v42, %v1121_v2  ;;  %1315 = vst.msk [vmem:[%s2798_s5 + $0x48] sm:$0xff] %vm1305_vm1, %v1228_v39  ;;  %v1158_v21 = vcvt.f32.s32 %v1156_v60  ;;  %v1157_v30 = vcvt.f32.s32 %v1154_v11  ;;  %v1350_v18 = vadd.f32 %v1349_v7, %v1280_v41 }
 0x3d7   :  { %vm1266_vm8 = vcmp.eq.s32.totalorder %v1942_v57, %v1228_v39 }
 0x3d8   :  { %vm1225_vm4 = vcmp.lt.s32.totalorder %v1124_v36, 2  ;;  %v1159_v20 = vshll.u32 %v1158_v21, 16  ;;  %v1282_v46 = vsel %vm1266_vm8, %v2564_v55, 0.0 }
 0x3d9   :  { %v1226_v32 = vsel %vm1225_vm4, %v1124_v36, 2  ;;  %v1142_v47 = vpop.xlane.xlu1 %1141  ;;  %v1144_v14 = vpop.xlane.xlu0 %1143 }
 0x3da   :  { %vm1265_vm6 = vcmp.eq.s32.totalorder %v1942_v57, %v1226_v32  ;;  %1314 = vst.msk [vmem:[%s2798_s5 + $0x40] sm:$0xff] %vm1305_vm1, %v1226_v32  ;;  %v1146_v43 = vcvt.f32.s32 %v1144_v14  ;;  %v1160_v22 = vadd.s32 %v1159_v20, %v1157_v30  ;;  %v1145_v13 = vcvt.f32.s32 %v1142_v47 }
 0x3db   :  { %v1281_v12 = vsel %vm1265_vm6, %v2555_v45, 0.0 }
 0x3dc   :  { %v1147_v25 = vshll.u32 %v1146_v43, 16  ;;  %vm1231_vm7 = vcmp.lt.s32.totalorder %v1160_v22, 2  ;;  %v1351_v3 = vadd.f32 %v1350_v18, %v1281_v12 }
 0x3dd   :  { %v1178_v15 = vpop.xlane.xlu1 %1177  ;;  %v1180_v61 = vpop.xlane.xlu0 %1179  ;;  %v1232_v62 = vsel %vm1231_vm7, %v1160_v22, 2 }
 0x3de   :  { %v1148_v27 = vadd.s32 %v1147_v25, %v1145_v13  ;;  %1317 = vst.msk [vmem:[%s2798_s5 + $0x58] sm:$0xff] %vm1305_vm1, %v1232_v62  ;;  %v1182_v37 = vcvt.f32.s32 %v1180_v61  ;;  %v1181_v28 = vcvt.f32.s32 %v1178_v15  ;;  %v1352_v24 = vadd.f32 %v1351_v3, %v1282_v46 }
 0x3df   :  { %vm1268_vm12 = vcmp.eq.s32.totalorder %v1942_v57, %v1232_v62 }
 0x3e0   :  { %vm1229_vm9 = vcmp.lt.s32.totalorder %v1148_v27, 2  ;;  %v1183_v51 = vshll.u32 %v1182_v37, 16 }
 0x3e1   :  { %v1230_v33 = vsel %vm1229_vm9, %v1148_v27, 2  ;;  %v1166_v45 = vpop.xlane.xlu1 %1165  ;;  %v1168_v23 = vpop.xlane.xlu0 %1167 }
 0x3e2   :  { %vm1267_vm10 = vcmp.eq.s32.totalorder %v1942_v57, %v1230_v33  ;;  %1316 = vst.msk [vmem:[%s2798_s5 + $0x50] sm:$0xff] %vm1305_vm1, %v1230_v33  ;;  %v1170_v53 = vcvt.f32.s32 %v1168_v23  ;;  %v1184_v38 = vadd.s32 %v1183_v51, %v1181_v28  ;;  %v1169_v19 = vcvt.f32.s32 %v1166_v45 }
 0x3e3   :  { %v1283_v17 = vsel %vm1267_vm10, %v2573_v26, 0.0  ;;  %v1284_v26 = vsel %vm1268_vm12, %v2582_v48, 0.0 }
 0x3e4   :  { %v1171_v58 = vshll.u32 %v1170_v53, 16  ;;  %vm1235_vm11 = vcmp.lt.s32.totalorder %v1184_v38, 2  ;;  %v1353_v10 = vadd.f32 %v1352_v24, %v1283_v17 }
 0x3e5   :  { %v1190_v29 = vpop.xlane.xlu1 %1189  ;;  %v1192_v0 = vpop.xlane.xlu0 %1191  ;;  %v1236_v16 = vsel %vm1235_vm11, %v1184_v38, 2 }
 0x3e6   :  { %v1172_v34 = vadd.s32 %v1171_v58, %v1169_v19  ;;  %1319 = vst.msk [vmem:[%s2798_s5 + $0x68] sm:$0xff] %vm1305_vm1, %v1236_v16  ;;  %v1194_v55 = vcvt.f32.s32 %v1192_v0  ;;  %v1193_v44 = vcvt.f32.s32 %v1190_v29  ;;  %vm1270_vm14 = vcmp.eq.s32.totalorder %v1942_v57, %v1236_v16 }
 0x3e7   :  { %v1354_v40 = vadd.f32 %v1353_v10, %v1284_v26  ;;  %v1286_v42 = vsel %vm1270_vm14, %v2600_v8, 0.0 }
 0x3e8   :  { %vm1233_vm13 = vcmp.lt.s32.totalorder %v1172_v34, 2  ;;  %v1195_v4 = vshll.u32 %v1194_v55, 16 }
 0x3e9   :  { %v1234_v31 = vsel %vm1233_vm13, %v1172_v34, 2  ;;  %v1202_v59 = vpop.xlane.xlu1 %1201  ;;  %v1204_v50 = vpop.xlane.xlu0 %1203 }
 0x3ea   :  { %vm1269_vm15 = vcmp.eq.s32.totalorder %v1942_v57, %v1234_v31  ;;  %1318 = vst.msk [vmem:[%s2798_s5 + $0x60] sm:$0xff] %vm1305_vm1, %v1234_v31  ;;  %v1206_v9 = vcvt.f32.s32 %v1204_v50  ;;  %v1196_v35 = vadd.s32 %v1195_v4, %v1193_v44  ;;  %v1205_v49 = vcvt.f32.s32 %v1202_v59 }
 0x3eb   :  { %v1285_v56 = vsel %vm1269_vm15, %v2592_v52, 0.0 }
 0x3ec   :  { %v1355_v48 = vadd.f32 %v1354_v40, %v1285_v56  ;;  %v1207_v2 = vshll.u32 %v1206_v9, 16  ;;  %vm1237_vm0 = vcmp.lt.s32.totalorder %v1196_v35, 2 }
 0x3ed   :  { %v1238_v60 = vsel %vm1237_vm0, %v1196_v35, 2 }
 0x3ee   :  { %v1356_v11 = vadd.f32 %v1355_v48, %v1286_v42  ;;  %v1208_v39 = vadd.s32 %v1207_v2, %v1205_v49  ;;  %vm1271_vm2 = vcmp.eq.s32.totalorder %v1942_v57, %v1238_v60  ;;  %1320 = vst.msk [vmem:[%s2798_s5 + $0x70] sm:$0xff] %vm1305_vm1, %v1238_v60 }
 0x3ef   :  { %v1287_v36 = vsel %vm1271_vm2, %v2610_v6, 0.0 }
 0x3f0   :  { %vm1239_vm3 = vcmp.lt.s32.totalorder %v1208_v39, 2  ;;  %v1357_v5 = vadd.f32 %v1356_v11, %v1287_v36 }
 0x3f1   :  { %v1240_v52 = vsel %vm1239_vm3, %v1208_v39, 2 }
 0x3f2   :  { %vm1272_vm4 = vcmp.eq.s32.totalorder %v1942_v57, %v1240_v52  ;;  %1321 = vst.msk [vmem:[%s2798_s5 + $0x78] sm:$0xff] %vm1305_vm1, %v1240_v52 }
 0x3f3   :  { %v1288_v8 = vsel %vm1272_vm4, %v2618_v54, 0.0 }
 0x3f4   :  { %v1358_v63 = vadd.f32 %v1357_v5, %v1288_v8 }
 0x3f6   :  { %v1359_v21 = vrot.slane %v1358_v63, 4 }
 0x3f8   :  { %v1360_v1 = vadd.f32 %v1359_v21, %v1358_v63 }
 0x3fa   :  { %v1361_v32 = vrot.slane %v1360_v1, 2 }
 0x3fc   :  { %v1362_v30 = vadd.f32 %v1361_v32, %v1360_v1 }
 0x3fe   :  { %v1363_v6 = vrot.slane %v1362_v30, 1 }
 0x400   :  { %v1364_v20 = vadd.f32 %v1363_v6, %v1362_v30 }
 0x402   :  { %1365 = vst [vmem:[#allocation6] sm:$0x1] %v1364_v20 }
 0x403   :  { %1798 = shalt.err (!%p1795_p0)
}
 0x404   :  { %1399 = dma.vmem_to_hbm [thread:$0]  %s1397_s9, 16, %s2800_s7, [#allocation5]  }
 0x405   :  { %1807 = dma.done.wait [#allocation3], 2048  }
 0x406   :  { %1808 = vsyncadd [#allocation3], 4294965248 }
 0x407   :  { %1809 = dma.done.wait [#allocation5], 32  }
 0x408   :  { %1810 = vsyncadd [#allocation5], 4294967264 }
 0x409   :  { %1411 = vsyncpa [#allocation3], 1 }
 0x40a   :  { %1412 = vsyncpa [#allocation5], 1 }

</bundles_post_ra>
